<compile_context>
chip_gen: v6e
topology: v6e:2x2x1
jax: 0.10.0
libtpu: 0.0.40
codegen_flags: <defaults>
</compile_context>

<pallas_src>
import functools

import numpy as np
import jax
import jax.numpy as jnp
from jax import lax  # noqa: F401
from jax.experimental import pallas as pl
from jax.experimental.pallas import tpu as pltpu


_VMEM_LIMIT = 32 * 1024 * 1024  # safe scoped-VMEM budget on v5e/v6e/v7x


def _cp(*sem):
    return pltpu.CompilerParams(dimension_semantics=tuple(sem),
                                vmem_limit_bytes=_VMEM_LIMIT)


# ----------------------------- Pallas kernels ------------------------------

def _mm_bias_kernel(x_ref, w_ref, b_ref, o_ref, acc_ref):
    """Tiled y = x @ W + b with K-reduction accumulator (P3 pattern)."""
    @pl.when(pl.program_id(1) == 0)
    def _():
        acc_ref[...] = jnp.zeros_like(acc_ref)
    acc_ref[...] += jnp.dot(x_ref[...].astype(jnp.bfloat16), w_ref[...],
                            preferred_element_type=jnp.float32)

    @pl.when(pl.program_id(1) == pl.num_programs(1) - 1)
    def _():
        o_ref[...] = acc_ref[...] + b_ref[...]


def _mm_bias_res_kernel(x_ref, w_ref, b_ref, r_ref, o_ref, acc_ref):
    """Tiled y = r + x @ W + b  (residual add fused into the matmul epilogue)."""
    @pl.when(pl.program_id(1) == 0)
    def _():
        acc_ref[...] = jnp.zeros_like(acc_ref)
    acc_ref[...] += jnp.dot(x_ref[...].astype(jnp.bfloat16), w_ref[...],
                            preferred_element_type=jnp.float32)

    @pl.when(pl.program_id(1) == pl.num_programs(1) - 1)
    def _():
        o_ref[...] = acc_ref[...] + b_ref[...] + r_ref[...]


def pallas_linear(x, w, b=None, residual=None, tm=512, tk=512):
    """y = (residual +) x @ W + b, row-tiled & pipelined; bf16 MXU, f32 accum."""
    M, K = x.shape
    N = w.shape[1]
    if b is None:
        b = jnp.zeros((N,), jnp.float32)
    w = w.astype(jnp.bfloat16)
    b2 = b.reshape(1, N).astype(jnp.float32)

    tm_eff = M if M <= tm else tm
    nm = pl.cdiv(M, tm_eff)
    if K > tk and K % tk == 0:
        tk_eff, nk = tk, K // tk
    else:
        tk_eff, nk = K, 1

    in_specs = [pl.BlockSpec((tm_eff, tk_eff), lambda i, k: (i, k)),
                pl.BlockSpec((tk_eff, N), lambda i, k: (k, 0)),
                pl.BlockSpec((1, N), lambda i, k: (0, 0))]
    args = [x.astype(jnp.float32), w, b2]
    if residual is not None:
        in_specs.append(pl.BlockSpec((tm_eff, N), lambda i, k: (i, 0)))
        args.append(residual.astype(jnp.float32))
        kernel = _mm_bias_res_kernel
    else:
        kernel = _mm_bias_kernel

    return pl.pallas_call(
        kernel,
        out_shape=jax.ShapeDtypeStruct((M, N), jnp.float32),
        grid=(nm, nk),
        in_specs=in_specs,
        out_specs=pl.BlockSpec((tm_eff, N), lambda i, k: (i, 0)),
        scratch_shapes=[pltpu.VMEM((tm_eff, N), jnp.float32)],
        compiler_params=_cp("parallel", "arbitrary"),
    )(*args)


def _ffn_res_kernel(x_ref, w1_ref, w2_ref, o_ref):
    """Fused conv1(1x1) -> relu -> conv2(1x1) with residual: o = x + FFN(x)."""
    x = x_ref[...]
    h = jnp.dot(x.astype(jnp.bfloat16), w1_ref[...],
                preferred_element_type=jnp.float32)
    h = jnp.maximum(h, 0.0)               # configs.activation == 'relu' (f32)
    y = jnp.dot(h.astype(jnp.bfloat16), w2_ref[...],
                preferred_element_type=jnp.float32)
    o_ref[...] = x + y


def pallas_ffn_residual(x, w1, w2, tm=512):
    M, D = x.shape
    Dff = w1.shape[1]
    tm_eff = M if M <= tm else tm
    nm = pl.cdiv(M, tm_eff)
    return pl.pallas_call(
        _ffn_res_kernel,
        out_shape=jax.ShapeDtypeStruct((M, D), jnp.float32),
        grid=(nm,),
        in_specs=[pl.BlockSpec((tm_eff, D), lambda i: (i, 0)),
                  pl.BlockSpec((D, Dff), lambda i: (0, 0)),
                  pl.BlockSpec((Dff, D), lambda i: (0, 0))],
        out_specs=pl.BlockSpec((tm_eff, D), lambda i: (i, 0)),
        compiler_params=_cp("parallel"),
    )(x.astype(jnp.float32), w1.astype(jnp.bfloat16), w2.astype(jnp.bfloat16))


def _ln_kernel(x_ref, g_ref, b_ref, o_ref):
    x = x_ref[...]
    mu = jnp.mean(x, axis=-1, keepdims=True)
    xc = x - mu
    var = jnp.mean(xc * xc, axis=-1, keepdims=True)
    o_ref[...] = xc * jax.lax.rsqrt(var + 1e-5) * g_ref[...] + b_ref[...]


def pallas_layernorm(x, g, b, tm=1024):
    """nn.LayerNorm(d_model) over the last dim of x:(B,L,D), row-tiled."""
    B, L, D = x.shape
    M = B * L
    tm_eff = M if M <= tm else tm
    nm = pl.cdiv(M, tm_eff)
    out = pl.pallas_call(
        _ln_kernel,
        out_shape=jax.ShapeDtypeStruct((M, D), jnp.float32),
        grid=(nm,),
        in_specs=[pl.BlockSpec((tm_eff, D), lambda i: (i, 0)),
                  pl.BlockSpec((1, D), lambda i: (0, 0)),
                  pl.BlockSpec((1, D), lambda i: (0, 0))],
        out_specs=pl.BlockSpec((tm_eff, D), lambda i: (i, 0)),
        compiler_params=_cp("parallel"),
    )(x.reshape(M, D), g.reshape(1, D), b.reshape(1, D))
    return out.reshape(B, L, D)


def _ln_proj_kernel(x_ref, g_ref, b_ref, w_ref, pb_ref, o_ref):
    """Fused LayerNorm + final linear projection (decoder output)."""
    x = x_ref[...]
    mu = jnp.mean(x, axis=-1, keepdims=True)
    xc = x - mu
    var = jnp.mean(xc * xc, axis=-1, keepdims=True)
    xn = xc * jax.lax.rsqrt(var + 1e-5) * g_ref[...] + b_ref[...]
    o_ref[...] = jnp.dot(xn.astype(jnp.bfloat16), w_ref[...],
                         preferred_element_type=jnp.float32) + pb_ref[...]


def pallas_layernorm_proj(x, g, b, w, pb, tm=1024):
    B, L, D = x.shape
    N = w.shape[1]
    M = B * L
    tm_eff = M if M <= tm else tm
    nm = pl.cdiv(M, tm_eff)
    out = pl.pallas_call(
        _ln_proj_kernel,
        out_shape=jax.ShapeDtypeStruct((M, N), jnp.float32),
        grid=(nm,),
        in_specs=[pl.BlockSpec((tm_eff, D), lambda i: (i, 0)),
                  pl.BlockSpec((1, D), lambda i: (0, 0)),
                  pl.BlockSpec((1, D), lambda i: (0, 0)),
                  pl.BlockSpec((D, N), lambda i: (0, 0)),
                  pl.BlockSpec((1, N), lambda i: (0, 0))],
        out_specs=pl.BlockSpec((tm_eff, N), lambda i: (i, 0)),
        compiler_params=_cp("parallel"),
    )(x.reshape(M, D), g.reshape(1, D), b.reshape(1, D),
      w.astype(jnp.bfloat16), pb.reshape(1, N).astype(jnp.float32))
    return out.reshape(B, L, N)


def _embed_kernel(xp_ref, xm_ref, w0_ref, w1_ref, w2_ref, wt_ref, o_ref, *, L):
    """DataEmbedding_wo_pos: circular k=3 token conv (3 shifted matmuls of the
    padded slab) fused with the timeF linear embedding.  One batch per step."""
    xp = xp_ref[0].astype(jnp.bfloat16)          # (L+2, Cin)
    xm = xm_ref[0].astype(jnp.bfloat16)          # (L, Cm)
    y = jnp.dot(xp[0:L, :], w0_ref[...], preferred_element_type=jnp.float32)
    y = y + jnp.dot(xp[1:L + 1, :], w1_ref[...], preferred_element_type=jnp.float32)
    y = y + jnp.dot(xp[2:L + 2, :], w2_ref[...], preferred_element_type=jnp.float32)
    y = y + jnp.dot(xm, wt_ref[...], preferred_element_type=jnp.float32)
    o_ref[0] = y


def pallas_embed(x, x_mark, token_w, time_w):
    """x:(B,L,Cin) channels-last, token_w:(D,Cin,3) torch layout, time_w:(Cm,D)."""
    B, L, Cin = x.shape
    Cm = x_mark.shape[-1]
    D = token_w.shape[0]
    xpad = jnp.concatenate([x[:, -1:, :], x, x[:, :1, :]], axis=1)   # circular pad 1
    w0 = token_w[:, :, 0].T.astype(jnp.bfloat16)
    w1 = token_w[:, :, 1].T.astype(jnp.bfloat16)
    w2 = token_w[:, :, 2].T.astype(jnp.bfloat16)
    wt = time_w.astype(jnp.bfloat16)
    return pl.pallas_call(
        functools.partial(_embed_kernel, L=L),
        out_shape=jax.ShapeDtypeStruct((B, L, D), jnp.float32),
        grid=(B,),
        in_specs=[pl.BlockSpec((1, L + 2, Cin), lambda bb: (bb, 0, 0)),
                  pl.BlockSpec((1, L, Cm), lambda bb: (bb, 0, 0)),
                  pl.BlockSpec((Cin, D), lambda bb: (0, 0)),
                  pl.BlockSpec((Cin, D), lambda bb: (0, 0)),
                  pl.BlockSpec((Cin, D), lambda bb: (0, 0)),
                  pl.BlockSpec((Cm, D), lambda bb: (0, 0))],
        out_specs=pl.BlockSpec((1, L, D), lambda bb: (bb, 0, 0)),
        compiler_params=_cp("parallel"),
    )(xpad.astype(jnp.float32), x_mark.astype(jnp.float32), w0, w1, w2, wt)


def _cconv3_kernel(xp_ref, w0_ref, w1_ref, w2_ref, o_ref, *, L):
    """Circular Conv1d(kernel=3, bias=False) as three shifted matmuls."""
    xp = xp_ref[0].astype(jnp.bfloat16)
    y = jnp.dot(xp[0:L, :], w0_ref[...], preferred_element_type=jnp.float32)
    y = y + jnp.dot(xp[1:L + 1, :], w1_ref[...], preferred_element_type=jnp.float32)
    y = y + jnp.dot(xp[2:L + 2, :], w2_ref[...], preferred_element_type=jnp.float32)
    o_ref[0] = y


def pallas_cconv3(x, w_oc3):
    """x:(B,L,Cin), w_oc3:(Cout,Cin,3) PyTorch Conv1d layout, circular padding."""
    B, L, C = x.shape
    Cout = w_oc3.shape[0]
    xpad = jnp.concatenate([x[:, -1:, :], x, x[:, :1, :]], axis=1)
    w0 = w_oc3[:, :, 0].T.astype(jnp.bfloat16)
    w1 = w_oc3[:, :, 1].T.astype(jnp.bfloat16)
    w2 = w_oc3[:, :, 2].T.astype(jnp.bfloat16)
    return pl.pallas_call(
        functools.partial(_cconv3_kernel, L=L),
        out_shape=jax.ShapeDtypeStruct((B, L, Cout), jnp.float32),
        grid=(B,),
        in_specs=[pl.BlockSpec((1, L + 2, C), lambda bb: (bb, 0, 0)),
                  pl.BlockSpec((C, Cout), lambda bb: (0, 0)),
                  pl.BlockSpec((C, Cout), lambda bb: (0, 0)),
                  pl.BlockSpec((C, Cout), lambda bb: (0, 0))],
        out_specs=pl.BlockSpec((1, L, Cout), lambda bb: (bb, 0, 0)),
        compiler_params=_cp("parallel"),
    )(xpad.astype(jnp.float32), w0, w1, w2)


def _decomp_res_kernel(xp_ref, res_ref, *, k, L):
    pad = (k - 1) // 2
    xp = xp_ref[0]                               # (L + 2*pad, C)
    acc = xp[0:L, :]
    for j in range(1, k):
        acc = acc + xp[j:j + L, :]
    res_ref[0] = xp[pad:pad + L, :] - acc * (1.0 / k)


def _decomp_res_mean_kernel(xp_ref, res_ref, mean_ref, *, k, L):
    pad = (k - 1) // 2
    xp = xp_ref[0]
    acc = xp[0:L, :]
    for j in range(1, k):
        acc = acc + xp[j:j + L, :]
    m = acc * (1.0 / k)
    mean_ref[0] = m
    res_ref[0] = xp[pad:pad + L, :] - m


def _pad_ma(x, k):
    pad = (k - 1) // 2
    front = jnp.repeat(x[:, :1, :], pad, axis=1)
    end = jnp.repeat(x[:, -1:, :], pad, axis=1)
    return jnp.concatenate([front, x, end], axis=1)


def series_decomp_res(x, k):
    """FEDformer series_decomp, residual-only output (no dead mean writeback)."""
    B, L, C = x.shape
    xpad = _pad_ma(x, k)
    Lp = xpad.shape[1]
    return pl.pallas_call(
        functools.partial(_decomp_res_kernel, k=k, L=L),
        out_shape=jax.ShapeDtypeStruct((B, L, C), jnp.float32),
        grid=(B,),
        in_specs=[pl.BlockSpec((1, Lp, C), lambda bb: (bb, 0, 0))],
        out_specs=pl.BlockSpec((1, L, C), lambda bb: (bb, 0, 0)),
        compiler_params=_cp("parallel"),
    )(xpad.astype(jnp.float32))


def series_decomp(x, k):
    """FEDformer series_decomp returning (residual, moving-average trend)."""
    B, L, C = x.shape
    xpad = _pad_ma(x, k)
    Lp = xpad.shape[1]
    res, mean = pl.pallas_call(
        functools.partial(_decomp_res_mean_kernel, k=k, L=L),
        out_shape=(jax.ShapeDtypeStruct((B, L, C), jnp.float32),
                   jax.ShapeDtypeStruct((B, L, C), jnp.float32)),
        grid=(B,),
        in_specs=[pl.BlockSpec((1, Lp, C), lambda bb: (bb, 0, 0))],
        out_specs=(pl.BlockSpec((1, L, C), lambda bb: (bb, 0, 0)),
                   pl.BlockSpec((1, L, C), lambda bb: (bb, 0, 0))),
        compiler_params=_cp("parallel"),
    )(xpad.astype(jnp.float32))
    return res, mean


# ------------------------------ model pieces -------------------------------

def get_frequency_modes(seq_len, modes, mode_select_method='low'):
    modes = min(modes, seq_len // 2)
    return list(range(modes))  # 'low' selection (deterministic)


def make_self_dft(L, index):
    """Real forward/inverse DFT matrices matching rfft mode selection and
    irfft of the zero-padded spectrum (Im of DC/Nyquist bins ignored)."""
    idx = np.asarray(index, dtype=np.float64)
    pos = np.arange(len(index), dtype=np.float64)  # FourierBlock writes back at list positions
    l = np.arange(L, dtype=np.float64)[:, None]
    ang_f = 2.0 * np.pi * l * idx[None, :] / L
    Fr = np.cos(ang_f)
    Fi = -np.sin(ang_f)
    ang_g = 2.0 * np.pi * l * pos[None, :] / L
    is_dc_nyq = np.logical_or(pos == 0,
                              np.logical_and(L % 2 == 0, pos == L // 2))
    dup = np.where(is_dc_nyq, 1.0, 2.0)
    Gr = dup[None, :] * np.cos(ang_g) / L
    Gi = -dup[None, :] * np.sin(ang_g) / L
    Gi[:, is_dc_nyq] = 0.0
    return (jnp.asarray(Fr, jnp.float32), jnp.asarray(Fi, jnp.float32),
            jnp.asarray(Gr, jnp.float32), jnp.asarray(Gi, jnp.float32))


def noise_divider(x_bcl):
    # TODO(synk): NosieDivider source not provided; approximated as an FFT
    # low/high frequency split (low half -> trend, high half -> noise) + masks.
    L = x_bcl.shape[-1]
    xf = jnp.fft.rfft(x_bcl, axis=-1)
    nfreq = xf.shape[-1]
    tmask = jnp.arange(nfreq) < (nfreq // 2)
    nmask = ~tmask
    trend = jnp.fft.irfft(xf * tmask.astype(xf.dtype), n=L, axis=-1)
    noise = jnp.fft.irfft(xf * nmask.astype(xf.dtype), n=L, axis=-1)
    return trend, noise, tmask, nmask


def fourier_self_block(p, x, dft, n_heads):
    """x -> x + out_proj(FourierBlock(query_proj(x))); residual fused into the
    output-projection Pallas kernel.  rfft/irfft replaced by real DFT matmuls.
    (FourierBlock only uses the query projection -- dead k/v projections skipped.)"""
    B, L, D = x.shape
    H, E = n_heads, D // n_heads
    Fr, Fi, Gr, Gi = dft
    q = pallas_linear(x.reshape(B * L, D), p['Wq'], p['bq']).reshape(B, L, H, E)
    # forward DFT over time at the selected modes (real arithmetic)
    Xr = jnp.einsum('blhe,lm->bhem', q, Fr)
    Xi = jnp.einsum('blhe,lm->bhem', q, Fi)
    # per-head complex mode mixing, split into real/imag parts
    # TODO(synk): tiny per-head/per-mode contraction (E = d_model/H) left in XLA.
    Or = (jnp.einsum('bhem,heom->bhom', Xr, p['fwr'])
          - jnp.einsum('bhem,heom->bhom', Xi, p['fwi']))
    Oi = (jnp.einsum('bhem,heom->bhom', Xr, p['fwi'])
          + jnp.einsum('bhem,heom->bhom', Xi, p['fwr']))
    # inverse DFT to (B,H,E,L), then the faithful FEDformer .view() quirk
    xt = (jnp.einsum('bhom,lm->bhol', Or, Gr)
          + jnp.einsum('bhom,lm->bhol', Oi, Gi))
    out = xt.reshape(B, L, H * E)
    return pallas_linear(out.reshape(B * L, D), p['Wo'], p['bo'],
                         residual=x.reshape(B * L, D)).reshape(B, L, D)


def fourier_cross_block(p, x, cross, index_q, index_kv, n_heads):
    """x -> x + out_proj(FourierCrossAttention(q(x), k(cross))), tanh activation.
    Complex FFT / complex tanh kept in jnp (no complex support in Mosaic)."""
    B, Lq, D = x.shape
    _, Lkv, _ = cross.shape
    H, E = n_heads, D // n_heads
    q = pallas_linear(x.reshape(B * Lq, D), p['Wq'], p['bq']).reshape(B, Lq, H, E)
    k = pallas_linear(cross.reshape(B * Lkv, D), p['Wk'], p['bk']).reshape(B, Lkv, H, E)
    # value projection is unused by FourierCrossAttention (reuses xk_ft_) -> skipped
    xq = jnp.transpose(q, (0, 2, 3, 1))
    xk = jnp.transpose(k, (0, 2, 3, 1))
    xq_ft = jnp.fft.rfft(xq, axis=-1)[..., jnp.array(index_q)]
    xk_ft = jnp.fft.rfft(xk, axis=-1)[..., jnp.array(index_kv)]
    xqk = jnp.tanh(jnp.einsum('bhex,bhey->bhxy', xq_ft, xk_ft))
    xqkv = jnp.einsum('bhxy,bhey->bhex', xqk, xk_ft)
    fw = (p['fwr'] + 1j * p['fwi']).astype(jnp.complex64)
    xqkvw = jnp.einsum('bhex,heox->bhox', xqkv, fw)
    nf = Lq // 2 + 1
    out_ft = jnp.zeros((B, H, E, nf), jnp.complex64).at[..., :len(index_q)].set(xqkvw)
    out = jnp.fft.irfft(out_ft / (D * D), n=Lq, axis=-1)      # / in_ch / out_ch
    out = out.reshape(B, Lq, H * E)                            # faithful .view() quirk
    return pallas_linear(out.reshape(B * Lq, D), p['Wo'], p['bo'],
                         residual=x.reshape(B * Lq, D)).reshape(B, Lq, D)


def encoder_layer(p, x, k_ma, dft, n_heads):
    x = fourier_self_block(p['attn'], x, dft, n_heads)         # includes +x
    x = series_decomp_res(x, k_ma)
    B, L, D = x.shape
    x = pallas_ffn_residual(x.reshape(B * L, D), p['w1'], p['w2']).reshape(B, L, D)
    x = series_decomp_res(x, k_ma)
    return x


def encoder_stack(p, x, k_ma, dft, n_heads):
    for lp in p['layers']:
        x = encoder_layer(lp, x, k_ma, dft, n_heads)
    return pallas_layernorm(x, p['norm_g'], p['norm_b'])


def decoder_layer(p, x, cross, k_ma, dft_self, idx_q, idx_kv, n_heads):
    x = fourier_self_block(p['self_attn'], x, dft_self, n_heads)
    x, trend1 = series_decomp(x, k_ma)
    x = fourier_cross_block(p['cross_attn'], x, cross, idx_q, idx_kv, n_heads)
    x, trend2 = series_decomp(x, k_ma)
    B, L, D = x.shape
    x = pallas_ffn_residual(x.reshape(B * L, D), p['w1'], p['w2']).reshape(B, L, D)
    x, trend3 = series_decomp(x, k_ma)
    residual_trend = trend1 + trend2 + trend3
    residual_trend = pallas_cconv3(residual_trend, p['trend_proj_w'])
    return x, residual_trend


def decoder_stack(p, x, cross, trend, k_ma, dft_self, idx_q, idx_kv, n_heads):
    for lp in p['layers']:
        x, rt = decoder_layer(lp, x, cross, k_ma, dft_self, idx_q, idx_kv, n_heads)
        trend = trend + rt
    seasonal = pallas_layernorm_proj(x, p['norm_g'], p['norm_b'],
                                     p['proj_w'], p['proj_b'])
    return seasonal, trend


def fwnd_forward(params, cfg, x_enc, x_mark_enc, x_dec, x_mark_dec):
    pred_len, label_len = cfg['pred_len'], cfg['label_len']
    k_ma, H = cfg['moving_avg'], cfg['n_heads']

    mean = jnp.repeat(jnp.mean(x_enc, axis=1, keepdims=True), pred_len, axis=1)
    seasonal_init, trend_init = series_decomp(x_enc, k_ma)
    trend_bcl = jnp.transpose(trend_init, (0, 2, 1))
    trend_bcl, noise_bcl, _tm, _nm = noise_divider(trend_bcl)
    trend_init = jnp.transpose(trend_bcl, (0, 2, 1))
    noise_init = jnp.transpose(noise_bcl, (0, 2, 1))
    trend_init = jnp.concatenate([trend_init[:, -label_len:, :], mean], axis=1)
    seasonal_init = jnp.pad(seasonal_init[:, -label_len:, :],
                            ((0, 0), (0, pred_len), (0, 0)))
    # enc_out = x_enc - noise_init   # dead assignment in the reference forward

    enc_out = pallas_embed(x_enc, x_mark_enc,
                           params['enc_emb']['token_w'], params['enc_emb']['time_w'])
    enc_noise = pallas_embed(noise_init, x_mark_enc,
                             params['enc_emb']['token_w'], params['enc_emb']['time_w'])
    enc_out = encoder_stack(params['encoder'], enc_out, k_ma, cfg['dft_enc'], H)
    enc_noise = encoder_stack(params['noise_encoder'], enc_noise, k_ma,
                              cfg['dft_enc'], H)
    enc_out = enc_out + enc_noise

    dec_out = pallas_embed(seasonal_init, x_mark_dec,
                           params['dec_emb']['token_w'], params['dec_emb']['time_w'])
    seasonal_part, trend_part = decoder_stack(
        params['decoder'], dec_out, enc_out, trend_init, k_ma,
        cfg['dft_dec'], cfg['index_cross_q'], cfg['index_cross_kv'], H)
    dec_out = trend_part + seasonal_part
    return dec_out[:, -pred_len:, :]


# ------------------------------- parameters --------------------------------

def init_params(key, cfg):
    d_model, d_ff = cfg['d_model'], cfg['d_ff']
    enc_in, dec_in, c_out = cfg['enc_in'], cfg['dec_in'], cfg['c_out']
    mark_dim, H = cfg['mark_dim'], cfg['n_heads']
    E = d_model // H
    keys = iter(jax.random.split(key, 128))

    def nrm(shape, scale=0.02):
        return scale * jax.random.normal(next(keys), shape, dtype=jnp.float32)

    def fourier_w(m):
        scale = 1.0 / (d_model * d_model)
        shape = (H, E, E, m)
        fwr = scale * jax.random.uniform(next(keys), shape, dtype=jnp.float32)
        fwi = scale * jax.random.uniform(next(keys), shape, dtype=jnp.float32)
        return fwr, fwi

    def attn_params(m):
        fwr, fwi = fourier_w(m)
        return {'Wq': nrm((d_model, d_model)), 'bq': jnp.zeros((d_model,), jnp.float32),
                'Wk': nrm((d_model, d_model)), 'bk': jnp.zeros((d_model,), jnp.float32),
                'Wo': nrm((d_model, d_model)), 'bo': jnp.zeros((d_model,), jnp.float32),
                'fwr': fwr, 'fwi': fwi}

    def embedding_params(c_in):
        return {'token_w': nrm((d_model, c_in, 3)),   # Conv1d weight (out,in,kw)
                'time_w': nrm((mark_dim, d_model))}   # timeF Linear, bias=False

    def enc_layer_params():
        return {'attn': attn_params(len(cfg['index_enc'])),
                'w1': nrm((d_model, d_ff)), 'w2': nrm((d_ff, d_model))}

    def dec_layer_params():
        return {'self_attn': attn_params(len(cfg['index_dec_self'])),
                'cross_attn': attn_params(len(cfg['index_cross_q'])),
                'w1': nrm((d_model, d_ff)), 'w2': nrm((d_ff, d_model)),
                'trend_proj_w': nrm((c_out, d_model, 3))}

    def enc_stack_params():
        return {'layers': [enc_layer_params() for _ in range(cfg['e_layers'])],
                'norm_g': jnp.ones((d_model,), jnp.float32),
                'norm_b': jnp.zeros((d_model,), jnp.float32)}

    return {'enc_emb': embedding_params(enc_in),
            'dec_emb': embedding_params(dec_in),
            'encoder': enc_stack_params(),
            'noise_encoder': enc_stack_params(),
            'decoder': {'layers': [dec_layer_params() for _ in range(cfg['d_layers'])],
                        'norm_g': jnp.ones((d_model,), jnp.float32),
                        'norm_b': jnp.zeros((d_model,), jnp.float32),
                        'proj_w': nrm((d_model, c_out)),
                        'proj_b': jnp.zeros((c_out,), jnp.float32)}}


# ---------------------------------- main ------------------------------------

if __name__ == "__main__":
    cfg = dict(seq_len=16, label_len=8, pred_len=8,
               enc_in=4, dec_in=4, c_out=4,
               d_model=32, n_heads=8, d_ff=64,
               e_layers=1, d_layers=1,
               moving_avg=5, modes=4, mark_dim=4)  # freq='h' -> 4 time features
    L_dec = cfg['seq_len'] // 2 + cfg['pred_len']  # == label_len + pred_len
    cfg['index_enc'] = get_frequency_modes(cfg['seq_len'], cfg['modes'])
    cfg['index_dec_self'] = get_frequency_modes(L_dec, cfg['modes'])
    cfg['index_cross_q'] = get_frequency_modes(L_dec, cfg['modes'])
    cfg['index_cross_kv'] = get_frequency_modes(cfg['seq_len'], cfg['modes'])
    cfg['dft_enc'] = make_self_dft(cfg['seq_len'], cfg['index_enc'])
    cfg['dft_dec'] = make_self_dft(L_dec, cfg['index_dec_self'])

    key = jax.random.PRNGKey(0)
    kp, k1, k2, k3, k4 = jax.random.split(key, 5)
    params = init_params(kp, cfg)

    B = 2
    x_enc = jax.random.normal(k1, (B, cfg['seq_len'], cfg['enc_in']), jnp.float32)
    x_mark_enc = jax.random.normal(k2, (B, cfg['seq_len'], cfg['mark_dim']), jnp.float32)
    x_dec = jax.random.normal(k3, (B, L_dec, cfg['dec_in']), jnp.float32)
    x_mark_dec = jax.random.normal(k4, (B, L_dec, cfg['mark_dim']), jnp.float32)

    fwd = jax.jit(lambda a, b, c, d: fwnd_forward(params, cfg, a, b, c, d))
    out = jax.block_until_ready(fwd(x_enc, x_mark_enc, x_dec, x_mark_dec))

    assert out.shape == (B, cfg['pred_len'], cfg['c_out']), out.shape
    assert bool(jnp.all(jnp.isfinite(out)))
    print("KERNEL_OK")
</pallas_src>

<mosaic_0001>
module attributes {stable_mosaic.version = 11 : i64} {
  func.func @_decomp_res_mean_kernel(%arg0: i32, %arg1: memref<1x20x4xf32, #tpu.memory_space<vmem>>, %arg2: memref<1x16x4xf32, #tpu.memory_space<vmem>>, %arg3: memref<1x16x4xf32, #tpu.memory_space<vmem>>) attributes {dimension_semantics = [#tpu.dimension_semantics<parallel>], iteration_bounds = array<i64: 2>, scalar_prefetch = 0 : i64, scratch_operands = 0 : i64, tpu.core_type = #tpu.core_type<tc>, window_params = [{transform_indices = @transform_0, window_bounds = array<i64: 1, 20, 4>}, {transform_indices = @transform_1, window_bounds = array<i64: 1, 16, 4>}, {transform_indices = @transform_2, window_bounds = array<i64: 1, 16, 4>}]} {
    %c0 = arith.constant 0 : index
    %c0_0 = arith.constant 0 : index
    %c0_1 = arith.constant 0 : index
    %0 = vector.load %arg1[%c0, %c0_0, %c0_1] : memref<1x20x4xf32, #tpu.memory_space<vmem>>, vector<1x20x4xf32>
    %1 = vector.shape_cast %0 : vector<1x20x4xf32> to vector<20x4xf32>
    %2 = vector.extract_strided_slice %1 {offsets = [0, 0], sizes = [16, 4], strides = [1, 1]} : vector<20x4xf32> to vector<16x4xf32>
    %3 = vector.extract_strided_slice %1 {offsets = [1, 0], sizes = [16, 4], strides = [1, 1]} : vector<20x4xf32> to vector<16x4xf32>
    %4 = arith.addf %2, %3 : vector<16x4xf32>
    %5 = vector.extract_strided_slice %1 {offsets = [2, 0], sizes = [16, 4], strides = [1, 1]} : vector<20x4xf32> to vector<16x4xf32>
    %6 = arith.addf %4, %5 : vector<16x4xf32>
    %7 = vector.extract_strided_slice %1 {offsets = [3, 0], sizes = [16, 4], strides = [1, 1]} : vector<20x4xf32> to vector<16x4xf32>
    %8 = arith.addf %6, %7 : vector<16x4xf32>
    %9 = vector.extract_strided_slice %1 {offsets = [4, 0], sizes = [16, 4], strides = [1, 1]} : vector<20x4xf32> to vector<16x4xf32>
    %10 = arith.addf %8, %9 : vector<16x4xf32>
    %cst = arith.constant 2.000000e-01 : f32
    %11 = vector.broadcast %cst : f32 to vector<16x4xf32>
    %12 = arith.mulf %10, %11 : vector<16x4xf32>
    %c0_2 = arith.constant 0 : index
    %c0_3 = arith.constant 0 : index
    %c0_4 = arith.constant 0 : index
    %13 = vector.load %arg3[%c0_2, %c0_3, %c0_4] : memref<1x16x4xf32, #tpu.memory_space<vmem>>, vector<1x16x4xf32>
    %14 = vector.shape_cast %13 : vector<1x16x4xf32> to vector<16x4xf32>
    %15 = vector.shape_cast %12 : vector<16x4xf32> to vector<1x16x4xf32>
    tpu.vector_store %arg3[%c0_2, %c0_3, %c0_4], %15 {strides = array<i32>} : memref<1x16x4xf32, #tpu.memory_space<vmem>>, vector<1x16x4xf32>,
    %16 = vector.extract_strided_slice %1 {offsets = [2, 0], sizes = [16, 4], strides = [1, 1]} : vector<20x4xf32> to vector<16x4xf32>
    %17 = arith.subf %16, %12 : vector<16x4xf32>
    %c0_5 = arith.constant 0 : index
    %c0_6 = arith.constant 0 : index
    %c0_7 = arith.constant 0 : index
    %18 = vector.load %arg2[%c0_5, %c0_6, %c0_7] : memref<1x16x4xf32, #tpu.memory_space<vmem>>, vector<1x16x4xf32>
    %19 = vector.shape_cast %18 : vector<1x16x4xf32> to vector<16x4xf32>
    %20 = vector.shape_cast %17 : vector<16x4xf32> to vector<1x16x4xf32>
    tpu.vector_store %arg2[%c0_5, %c0_6, %c0_7], %20 {strides = array<i32>} : memref<1x16x4xf32, #tpu.memory_space<vmem>>, vector<1x16x4xf32>,
    return
  }
  func.func @transform_0(%arg0: i32) -> (i32, i32, i32) {
    %c0_i32 = arith.constant 0 : i32
    %c0_i32_0 = arith.constant 0 : i32
    %c0_i32_1 = arith.constant 0 : i32
    return %arg0, %c0_i32, %c0_i32_0 : i32, i32, i32
  }
  func.func @transform_1(%arg0: i32) -> (i32, i32, i32) {
    %c0_i32 = arith.constant 0 : i32
    %c0_i32_0 = arith.constant 0 : i32
    %c0_i32_1 = arith.constant 0 : i32
    return %arg0, %c0_i32, %c0_i32_0 : i32, i32, i32
  }
  func.func @transform_2(%arg0: i32) -> (i32, i32, i32) {
    %c0_i32 = arith.constant 0 : i32
    %c0_i32_0 = arith.constant 0 : i32
    %c0_i32_1 = arith.constant 0 : i32
    return %arg0, %c0_i32, %c0_i32_0 : i32, i32, i32
  }
}

module attributes {stable_mosaic.version = 11 : i64} {
  func.func @_embed_kernel(%arg0: i32, %arg1: memref<1x18x4xf32, #tpu.memory_space<vmem>>, %arg2: memref<1x16x4xf32, #tpu.memory_space<vmem>>, %arg3: memref<4x32xbf16, #tpu.memory_space<vmem>>, %arg4: memref<4x32xbf16, #tpu.memory_space<vmem>>, %arg5: memref<4x32xbf16, #tpu.memory_space<vmem>>, %arg6: memref<4x32xbf16, #tpu.memory_space<vmem>>, %arg7: memref<1x16x32xf32, #tpu.memory_space<vmem>>) attributes {dimension_semantics = [#tpu.dimension_semantics<parallel>], iteration_bounds = array<i64: 2>, scalar_prefetch = 0 : i64, scratch_operands = 0 : i64, tpu.core_type = #tpu.core_type<tc>, window_params = [{transform_indices = @transform_0, window_bounds = array<i64: 1, 18, 4>}, {transform_indices = @transform_1, window_bounds = array<i64: 1, 16, 4>}, {pipeline_mode = #tpu.pipeline_mode<synchronous>, transform_indices = @transform_2, window_bounds = array<i64: 4, 32>}, {pipeline_mode = #tpu.pipeline_mode<synchronous>, transform_indices = @transform_3, window_bounds = array<i64: 4, 32>}, {pipeline_mode = #tpu.pipeline_mode<synchronous>, transform_indices = @transform_4, window_bounds = array<i64: 4, 32>}, {pipeline_mode = #tpu.pipeline_mode<synchronous>, transform_indices = @transform_5, window_bounds = array<i64: 4, 32>}, {transform_indices = @transform_6, window_bounds = array<i64: 1, 16, 32>}]} {
    %c0 = arith.constant 0 : index
    %c0_0 = arith.constant 0 : index
    %c0_1 = arith.constant 0 : index
    %0 = vector.load %arg1[%c0, %c0_0, %c0_1] : memref<1x18x4xf32, #tpu.memory_space<vmem>>, vector<1x18x4xf32>
    %1 = vector.shape_cast %0 : vector<1x18x4xf32> to vector<18x4xf32>
    %2 = arith.truncf %1 : vector<18x4xf32> to vector<18x4xbf16>
    %c0_2 = arith.constant 0 : index
    %c0_3 = arith.constant 0 : index
    %c0_4 = arith.constant 0 : index
    %3 = vector.load %arg2[%c0_2, %c0_3, %c0_4] : memref<1x16x4xf32, #tpu.memory_space<vmem>>, vector<1x16x4xf32>
    %4 = vector.shape_cast %3 : vector<1x16x4xf32> to vector<16x4xf32>
    %5 = arith.truncf %4 : vector<16x4xf32> to vector<16x4xbf16>
    %6 = vector.extract_strided_slice %2 {offsets = [0, 0], sizes = [16, 4], strides = [1, 1]} : vector<18x4xbf16> to vector<16x4xbf16>
    %c0_5 = arith.constant 0 : index
    %c0_6 = arith.constant 0 : index
    %7 = vector.load %arg3[%c0_5, %c0_6] : memref<4x32xbf16, #tpu.memory_space<vmem>>, vector<4x32xbf16>
    %cst = arith.constant dense<0.000000e+00> : vector<16x32xf32>
    %8 = tpu.matmul %6, %7, %cst {dimension_numbers = #tpu.dot_dimension_numbers<[1], [0], [0], [1], [0, 0, 1, 1], [], []>} : vector<16x4xbf16>, vector<4x32xbf16>, vector<16x32xf32> -> vector<16x32xf32>
    %9 = vector.extract_strided_slice %2 {offsets = [1, 0], sizes = [16, 4], strides = [1, 1]} : vector<18x4xbf16> to vector<16x4xbf16>
    %c0_7 = arith.constant 0 : index
    %c0_8 = arith.constant 0 : index
    %10 = vector.load %arg4[%c0_7, %c0_8] : memref<4x32xbf16, #tpu.memory_space<vmem>>, vector<4x32xbf16>
    %cst_9 = arith.constant dense<0.000000e+00> : vector<16x32xf32>
    %11 = tpu.matmul %9, %10, %cst_9 {dimension_numbers = #tpu.dot_dimension_numbers<[1], [0], [0], [1], [0, 0, 1, 1], [], []>} : vector<16x4xbf16>, vector<4x32xbf16>, vector<16x32xf32> -> vector<16x32xf32>
    %12 = arith.addf %8, %11 : vector<16x32xf32>
    %13 = vector.extract_strided_slice %2 {offsets = [2, 0], sizes = [16, 4], strides = [1, 1]} : vector<18x4xbf16> to vector<16x4xbf16>
    %c0_10 = arith.constant 0 : index
    %c0_11 = arith.constant 0 : index
    %14 = vector.load %arg5[%c0_10, %c0_11] : memref<4x32xbf16, #tpu.memory_space<vmem>>, vector<4x32xbf16>
    %cst_12 = arith.constant dense<0.000000e+00> : vector<16x32xf32>
    %15 = tpu.matmul %13, %14, %cst_12 {dimension_numbers = #tpu.dot_dimension_numbers<[1], [0], [0], [1], [0, 0, 1, 1], [], []>} : vector<16x4xbf16>, vector<4x32xbf16>, vector<16x32xf32> -> vector<16x32xf32>
    %16 = arith.addf %12, %15 : vector<16x32xf32>
    %c0_13 = arith.constant 0 : index
    %c0_14 = arith.constant 0 : index
    %17 = vector.load %arg6[%c0_13, %c0_14] : memref<4x32xbf16, #tpu.memory_space<vmem>>, vector<4x32xbf16>
    %cst_15 = arith.constant dense<0.000000e+00> : vector<16x32xf32>
    %18 = tpu.matmul %5, %17, %cst_15 {dimension_numbers = #tpu.dot_dimension_numbers<[1], [0], [0], [1], [0, 0, 1, 1], [], []>} : vector<16x4xbf16>, vector<4x32xbf16>, vector<16x32xf32> -> vector<16x32xf32>
    %19 = arith.addf %16, %18 : vector<16x32xf32>
    %c0_16 = arith.constant 0 : index
    %c0_17 = arith.constant 0 : index
    %c0_18 = arith.constant 0 : index
    %20 = vector.load %arg7[%c0_16, %c0_17, %c0_18] : memref<1x16x32xf32, #tpu.memory_space<vmem>>, vector<1x16x32xf32>
    %21 = vector.shape_cast %20 : vector<1x16x32xf32> to vector<16x32xf32>
    %22 = vector.shape_cast %19 : vector<16x32xf32> to vector<1x16x32xf32>
    tpu.vector_store %arg7[%c0_16, %c0_17, %c0_18], %22 {strides = array<i32>} : memref<1x16x32xf32, #tpu.memory_space<vmem>>, vector<1x16x32xf32>,
    return
  }
  func.func @transform_0(%arg0: i32) -> (i32, i32, i32) {
    %c0_i32 = arith.constant 0 : i32
    %c0_i32_0 = arith.constant 0 : i32
    %c0_i32_1 = arith.constant 0 : i32
    return %arg0, %c0_i32, %c0_i32_0 : i32, i32, i32
  }
  func.func @transform_1(%arg0: i32) -> (i32, i32, i32) {
    %c0_i32 = arith.constant 0 : i32
    %c0_i32_0 = arith.constant 0 : i32
    %c0_i32_1 = arith.constant 0 : i32
    return %arg0, %c0_i32, %c0_i32_0 : i32, i32, i32
  }
  func.func @transform_2(%arg0: i32) -> (i32, i32) {
    %c0_i32 = arith.constant 0 : i32
    %c0_i32_0 = arith.constant 0 : i32
    %c0_i32_1 = arith.constant 0 : i32
    return %c0_i32, %c0_i32_0 : i32, i32
  }
  func.func @transform_3(%arg0: i32) -> (i32, i32) {
    %c0_i32 = arith.constant 0 : i32
    %c0_i32_0 = arith.constant 0 : i32
    %c0_i32_1 = arith.constant 0 : i32
    return %c0_i32, %c0_i32_0 : i32, i32
  }
  func.func @transform_4(%arg0: i32) -> (i32, i32) {
    %c0_i32 = arith.constant 0 : i32
    %c0_i32_0 = arith.constant 0 : i32
    %c0_i32_1 = arith.constant 0 : i32
    return %c0_i32, %c0_i32_0 : i32, i32
  }
  func.func @transform_5(%arg0: i32) -> (i32, i32) {
    %c0_i32 = arith.constant 0 : i32
    %c0_i32_0 = arith.constant 0 : i32
    %c0_i32_1 = arith.constant 0 : i32
    return %c0_i32, %c0_i32_0 : i32, i32
  }
  func.func @transform_6(%arg0: i32) -> (i32, i32, i32) {
    %c0_i32 = arith.constant 0 : i32
    %c0_i32_0 = arith.constant 0 : i32
    %c0_i32_1 = arith.constant 0 : i32
    return %arg0, %c0_i32, %c0_i32_0 : i32, i32, i32
  }
}

module attributes {stable_mosaic.version = 11 : i64} {
  func.func @_mm_bias_kernel(%arg0: i32, %arg1: i32, %arg2: memref<32x32xf32, #tpu.memory_space<vmem>>, %arg3: memref<32x32xbf16, #tpu.memory_space<vmem>>, %arg4: memref<1x32xf32, #tpu.memory_space<vmem>>, %arg5: memref<32x32xf32, #tpu.memory_space<vmem>>, %arg6: memref<32x32xf32, #tpu.memory_space<vmem>>) attributes {dimension_semantics = [#tpu.dimension_semantics<parallel>, #tpu.dimension_semantics<arbitrary>], iteration_bounds = array<i64: 1, 1>, scalar_prefetch = 0 : i64, scratch_operands = 1 : i64, tpu.core_type = #tpu.core_type<tc>, window_params = [{transform_indices = @transform_0, window_bounds = array<i64: 32, 32>}, {transform_indices = @transform_1, window_bounds = array<i64: 32, 32>}, {pipeline_mode = #tpu.pipeline_mode<synchronous>, transform_indices = @transform_2, window_bounds = array<i64: 1, 32>}, {transform_indices = @transform_3, window_bounds = array<i64: 32, 32>}]} {
    %c0_i32 = arith.constant 0 : i32
    %0 = arith.cmpi eq, %arg1, %c0_i32 : i32
    %1 = arith.extui %0 : i1 to i32
    %c0_i32_0 = arith.constant 0 : i32
    %2 = arith.cmpi ne, %1, %c0_i32_0 : i32
    scf.if %2 {
      %cst_10 = arith.constant 0.000000e+00 : f32
      %13 = vector.broadcast %cst_10 : f32 to vector<32x32xf32>
      %c0_11 = arith.constant 0 : index
      %c0_12 = arith.constant 0 : index
      %14 = vector.load %arg6[%c0_11, %c0_12] : memref<32x32xf32, #tpu.memory_space<vmem>>, vector<32x32xf32>
      tpu.vector_store %arg6[%c0_11, %c0_12], %13 {strides = array<i32>} : memref<32x32xf32, #tpu.memory_space<vmem>>, vector<32x32xf32>,
    } else {
    }
    %c0 = arith.constant 0 : index
    %c0_1 = arith.constant 0 : index
    %3 = vector.load %arg6[%c0, %c0_1] : memref<32x32xf32, #tpu.memory_space<vmem>>, vector<32x32xf32>
    %c0_2 = arith.constant 0 : index
    %c0_3 = arith.constant 0 : index
    %4 = vector.load %arg2[%c0_2, %c0_3] : memref<32x32xf32, #tpu.memory_space<vmem>>, vector<32x32xf32>
    %5 = arith.truncf %4 : vector<32x32xf32> to vector<32x32xbf16>
    %c0_4 = arith.constant 0 : index
    %c0_5 = arith.constant 0 : index
    %6 = vector.load %arg3[%c0_4, %c0_5] : memref<32x32xbf16, #tpu.memory_space<vmem>>, vector<32x32xbf16>
    %cst = arith.constant dense<0.000000e+00> : vector<32x32xf32>
    %7 = tpu.matmul %5, %6, %cst {dimension_numbers = #tpu.dot_dimension_numbers<[1], [0], [0], [1], [0, 0, 1, 1], [], []>} : vector<32x32xbf16>, vector<32x32xbf16>, vector<32x32xf32> -> vector<32x32xf32>
    %8 = arith.addf %3, %7 : vector<32x32xf32>
    %c0_6 = arith.constant 0 : index
    %c0_7 = arith.constant 0 : index
    %9 = vector.load %arg6[%c0_6, %c0_7] : memref<32x32xf32, #tpu.memory_space<vmem>>, vector<32x32xf32>
    tpu.vector_store %arg6[%c0_6, %c0_7], %8 {strides = array<i32>} : memref<32x32xf32, #tpu.memory_space<vmem>>, vector<32x32xf32>,
    %c0_i32_8 = arith.constant 0 : i32
    %10 = arith.cmpi eq, %arg1, %c0_i32_8 : i32
    %11 = arith.extui %10 : i1 to i32
    %c0_i32_9 = arith.constant 0 : i32
    %12 = arith.cmpi ne, %11, %c0_i32_9 : i32
    scf.if %12 {
      %c0_10 = arith.constant 0 : index
      %c0_11 = arith.constant 0 : index
      %13 = vector.load %arg6[%c0_10, %c0_11] : memref<32x32xf32, #tpu.memory_space<vmem>>, vector<32x32xf32>
      %c0_12 = arith.constant 0 : index
      %c0_13 = arith.constant 0 : index
      %14 = vector.load %arg4[%c0_12, %c0_13] : memref<1x32xf32, #tpu.memory_space<vmem>>, vector<1x32xf32>
      %15 = vector.broadcast %14 : vector<1x32xf32> to vector<32x32xf32>
      %16 = arith.addf %13, %15 : vector<32x32xf32>
      %c0_14 = arith.constant 0 : index
      %c0_15 = arith.constant 0 : index
      %17 = vector.load %arg5[%c0_14, %c0_15] : memref<32x32xf32, #tpu.memory_space<vmem>>, vector<32x32xf32>
      tpu.vector_store %arg5[%c0_14, %c0_15], %16 {strides = array<i32>} : memref<32x32xf32, #tpu.memory_space<vmem>>, vector<32x32xf32>,
    } else {
    }
    return
  }
  func.func @transform_0(%arg0: i32, %arg1: i32) -> (i32, i32) {
    %c0_i32 = arith.constant 0 : i32
    return %arg0, %arg1 : i32, i32
  }
  func.func @transform_1(%arg0: i32, %arg1: i32) -> (i32, i32) {
    %c0_i32 = arith.constant 0 : i32
    %c0_i32_0 = arith.constant 0 : i32
    return %arg1, %c0_i32 : i32, i32
  }
  func.func @transform_2(%arg0: i32, %arg1: i32) -> (i32, i32) {
    %c0_i32 = arith.constant 0 : i32
    %c0_i32_0 = arith.constant 0 : i32
    %c0_i32_1 = arith.constant 0 : i32
    return %c0_i32, %c0_i32_0 : i32, i32
  }
  func.func @transform_3(%arg0: i32, %arg1: i32) -> (i32, i32) {
    %c0_i32 = arith.constant 0 : i32
    %c0_i32_0 = arith.constant 0 : i32
    return %arg0, %c0_i32 : i32, i32
  }
}

module attributes {stable_mosaic.version = 11 : i64} {
  func.func @_mm_bias_res_kernel(%arg0: i32, %arg1: i32, %arg2: memref<32x32xf32, #tpu.memory_space<vmem>>, %arg3: memref<32x32xbf16, #tpu.memory_space<vmem>>, %arg4: memref<1x32xf32, #tpu.memory_space<vmem>>, %arg5: memref<32x32xf32, #tpu.memory_space<vmem>>, %arg6: memref<32x32xf32, #tpu.memory_space<vmem>>, %arg7: memref<32x32xf32, #tpu.memory_space<vmem>>) attributes {dimension_semantics = [#tpu.dimension_semantics<parallel>, #tpu.dimension_semantics<arbitrary>], iteration_bounds = array<i64: 1, 1>, scalar_prefetch = 0 : i64, scratch_operands = 1 : i64, tpu.core_type = #tpu.core_type<tc>, window_params = [{transform_indices = @transform_0, window_bounds = array<i64: 32, 32>}, {transform_indices = @transform_1, window_bounds = array<i64: 32, 32>}, {pipeline_mode = #tpu.pipeline_mode<synchronous>, transform_indices = @transform_2, window_bounds = array<i64: 1, 32>}, {transform_indices = @transform_3, window_bounds = array<i64: 32, 32>}, {transform_indices = @transform_4, window_bounds = array<i64: 32, 32>}]} {
    %c0_i32 = arith.constant 0 : i32
    %0 = arith.cmpi eq, %arg1, %c0_i32 : i32
    %1 = arith.extui %0 : i1 to i32
    %c0_i32_0 = arith.constant 0 : i32
    %2 = arith.cmpi ne, %1, %c0_i32_0 : i32
    scf.if %2 {
      %cst_10 = arith.constant 0.000000e+00 : f32
      %13 = vector.broadcast %cst_10 : f32 to vector<32x32xf32>
      %c0_11 = arith.constant 0 : index
      %c0_12 = arith.constant 0 : index
      %14 = vector.load %arg7[%c0_11, %c0_12] : memref<32x32xf32, #tpu.memory_space<vmem>>, vector<32x32xf32>
      tpu.vector_store %arg7[%c0_11, %c0_12], %13 {strides = array<i32>} : memref<32x32xf32, #tpu.memory_space<vmem>>, vector<32x32xf32>,
    } else {
    }
    %c0 = arith.constant 0 : index
    %c0_1 = arith.constant 0 : index
    %3 = vector.load %arg7[%c0, %c0_1] : memref<32x32xf32, #tpu.memory_space<vmem>>, vector<32x32xf32>
    %c0_2 = arith.constant 0 : index
    %c0_3 = arith.constant 0 : index
    %4 = vector.load %arg2[%c0_2, %c0_3] : memref<32x32xf32, #tpu.memory_space<vmem>>, vector<32x32xf32>
    %5 = arith.truncf %4 : vector<32x32xf32> to vector<32x32xbf16>
    %c0_4 = arith.constant 0 : index
    %c0_5 = arith.constant 0 : index
    %6 = vector.load %arg3[%c0_4, %c0_5] : memref<32x32xbf16, #tpu.memory_space<vmem>>, vector<32x32xbf16>
    %cst = arith.constant dense<0.000000e+00> : vector<32x32xf32>
    %7 = tpu.matmul %5, %6, %cst {dimension_numbers = #tpu.dot_dimension_numbers<[1], [0], [0], [1], [0, 0, 1, 1], [], []>} : vector<32x32xbf16>, vector<32x32xbf16>, vector<32x32xf32> -> vector<32x32xf32>
    %8 = arith.addf %3, %7 : vector<32x32xf32>
    %c0_6 = arith.constant 0 : index
    %c0_7 = arith.constant 0 : index
    %9 = vector.load %arg7[%c0_6, %c0_7] : memref<32x32xf32, #tpu.memory_space<vmem>>, vector<32x32xf32>
    tpu.vector_store %arg7[%c0_6, %c0_7], %8 {strides = array<i32>} : memref<32x32xf32, #tpu.memory_space<vmem>>, vector<32x32xf32>,
    %c0_i32_8 = arith.constant 0 : i32
    %10 = arith.cmpi eq, %arg1, %c0_i32_8 : i32
    %11 = arith.extui %10 : i1 to i32
    %c0_i32_9 = arith.constant 0 : i32
    %12 = arith.cmpi ne, %11, %c0_i32_9 : i32
    scf.if %12 {
      %c0_10 = arith.constant 0 : index
      %c0_11 = arith.constant 0 : index
      %13 = vector.load %arg7[%c0_10, %c0_11] : memref<32x32xf32, #tpu.memory_space<vmem>>, vector<32x32xf32>
      %c0_12 = arith.constant 0 : index
      %c0_13 = arith.constant 0 : index
      %14 = vector.load %arg4[%c0_12, %c0_13] : memref<1x32xf32, #tpu.memory_space<vmem>>, vector<1x32xf32>
      %15 = vector.broadcast %14 : vector<1x32xf32> to vector<32x32xf32>
      %16 = arith.addf %13, %15 : vector<32x32xf32>
      %c0_14 = arith.constant 0 : index
      %c0_15 = arith.constant 0 : index
      %17 = vector.load %arg5[%c0_14, %c0_15] : memref<32x32xf32, #tpu.memory_space<vmem>>, vector<32x32xf32>
      %18 = arith.addf %16, %17 : vector<32x32xf32>
      %c0_16 = arith.constant 0 : index
      %c0_17 = arith.constant 0 : index
      %19 = vector.load %arg6[%c0_16, %c0_17] : memref<32x32xf32, #tpu.memory_space<vmem>>, vector<32x32xf32>
      tpu.vector_store %arg6[%c0_16, %c0_17], %18 {strides = array<i32>} : memref<32x32xf32, #tpu.memory_space<vmem>>, vector<32x32xf32>,
    } else {
    }
    return
  }
  func.func @transform_0(%arg0: i32, %arg1: i32) -> (i32, i32) {
    %c0_i32 = arith.constant 0 : i32
    return %arg0, %arg1 : i32, i32
  }
  func.func @transform_1(%arg0: i32, %arg1: i32) -> (i32, i32) {
    %c0_i32 = arith.constant 0 : i32
    %c0_i32_0 = arith.constant 0 : i32
    return %arg1, %c0_i32 : i32, i32
  }
  func.func @transform_2(%arg0: i32, %arg1: i32) -> (i32, i32) {
    %c0_i32 = arith.constant 0 : i32
    %c0_i32_0 = arith.constant 0 : i32
    %c0_i32_1 = arith.constant 0 : i32
    return %c0_i32, %c0_i32_0 : i32, i32
  }
  func.func @transform_3(%arg0: i32, %arg1: i32) -> (i32, i32) {
    %c0_i32 = arith.constant 0 : i32
    %c0_i32_0 = arith.constant 0 : i32
    return %arg0, %c0_i32 : i32, i32
  }
  func.func @transform_4(%arg0: i32, %arg1: i32) -> (i32, i32) {
    %c0_i32 = arith.constant 0 : i32
    %c0_i32_0 = arith.constant 0 : i32
    return %arg0, %c0_i32 : i32, i32
  }
}

module attributes {stable_mosaic.version = 11 : i64} {
  func.func @_decomp_res_kernel(%arg0: i32, %arg1: memref<1x20x32xf32, #tpu.memory_space<vmem>>, %arg2: memref<1x16x32xf32, #tpu.memory_space<vmem>>) attributes {dimension_semantics = [#tpu.dimension_semantics<parallel>], iteration_bounds = array<i64: 2>, scalar_prefetch = 0 : i64, scratch_operands = 0 : i64, tpu.core_type = #tpu.core_type<tc>, window_params = [{transform_indices = @transform_0, window_bounds = array<i64: 1, 20, 32>}, {transform_indices = @transform_1, window_bounds = array<i64: 1, 16, 32>}]} {
    %c0 = arith.constant 0 : index
    %c0_0 = arith.constant 0 : index
    %c0_1 = arith.constant 0 : index
    %0 = vector.load %arg1[%c0, %c0_0, %c0_1] : memref<1x20x32xf32, #tpu.memory_space<vmem>>, vector<1x20x32xf32>
    %1 = vector.shape_cast %0 : vector<1x20x32xf32> to vector<20x32xf32>
    %2 = vector.extract_strided_slice %1 {offsets = [0, 0], sizes = [16, 32], strides = [1, 1]} : vector<20x32xf32> to vector<16x32xf32>
    %3 = vector.extract_strided_slice %1 {offsets = [1, 0], sizes = [16, 32], strides = [1, 1]} : vector<20x32xf32> to vector<16x32xf32>
    %4 = arith.addf %2, %3 : vector<16x32xf32>
    %5 = vector.extract_strided_slice %1 {offsets = [2, 0], sizes = [16, 32], strides = [1, 1]} : vector<20x32xf32> to vector<16x32xf32>
    %6 = arith.addf %4, %5 : vector<16x32xf32>
    %7 = vector.extract_strided_slice %1 {offsets = [3, 0], sizes = [16, 32], strides = [1, 1]} : vector<20x32xf32> to vector<16x32xf32>
    %8 = arith.addf %6, %7 : vector<16x32xf32>
    %9 = vector.extract_strided_slice %1 {offsets = [4, 0], sizes = [16, 32], strides = [1, 1]} : vector<20x32xf32> to vector<16x32xf32>
    %10 = arith.addf %8, %9 : vector<16x32xf32>
    %11 = vector.extract_strided_slice %1 {offsets = [2, 0], sizes = [16, 32], strides = [1, 1]} : vector<20x32xf32> to vector<16x32xf32>
    %cst = arith.constant 2.000000e-01 : f32
    %12 = vector.broadcast %cst : f32 to vector<16x32xf32>
    %13 = arith.mulf %10, %12 : vector<16x32xf32>
    %14 = arith.subf %11, %13 : vector<16x32xf32>
    %c0_2 = arith.constant 0 : index
    %c0_3 = arith.constant 0 : index
    %c0_4 = arith.constant 0 : index
    %15 = vector.load %arg2[%c0_2, %c0_3, %c0_4] : memref<1x16x32xf32, #tpu.memory_space<vmem>>, vector<1x16x32xf32>
    %16 = vector.shape_cast %15 : vector<1x16x32xf32> to vector<16x32xf32>
    %17 = vector.shape_cast %14 : vector<16x32xf32> to vector<1x16x32xf32>
    tpu.vector_store %arg2[%c0_2, %c0_3, %c0_4], %17 {strides = array<i32>} : memref<1x16x32xf32, #tpu.memory_space<vmem>>, vector<1x16x32xf32>,
    return
  }
  func.func @transform_0(%arg0: i32) -> (i32, i32, i32) {
    %c0_i32 = arith.constant 0 : i32
    %c0_i32_0 = arith.constant 0 : i32
    %c0_i32_1 = arith.constant 0 : i32
    return %arg0, %c0_i32, %c0_i32_0 : i32, i32, i32
  }
  func.func @transform_1(%arg0: i32) -> (i32, i32, i32) {
    %c0_i32 = arith.constant 0 : i32
    %c0_i32_0 = arith.constant 0 : i32
    %c0_i32_1 = arith.constant 0 : i32
    return %arg0, %c0_i32, %c0_i32_0 : i32, i32, i32
  }
}

module attributes {stable_mosaic.version = 11 : i64} {
  func.func @_ffn_res_kernel(%arg0: i32, %arg1: memref<32x32xf32, #tpu.memory_space<vmem>>, %arg2: memref<32x64xbf16, #tpu.memory_space<vmem>>, %arg3: memref<64x32xbf16, #tpu.memory_space<vmem>>, %arg4: memref<32x32xf32, #tpu.memory_space<vmem>>) attributes {dimension_semantics = [#tpu.dimension_semantics<parallel>], iteration_bounds = array<i64: 1>, scalar_prefetch = 0 : i64, scratch_operands = 0 : i64, tpu.core_type = #tpu.core_type<tc>, window_params = [{transform_indices = @transform_0, window_bounds = array<i64: 32, 32>}, {pipeline_mode = #tpu.pipeline_mode<synchronous>, transform_indices = @transform_1, window_bounds = array<i64: 32, 64>}, {pipeline_mode = #tpu.pipeline_mode<synchronous>, transform_indices = @transform_2, window_bounds = array<i64: 64, 32>}, {transform_indices = @transform_3, window_bounds = array<i64: 32, 32>}]} {
    %c0 = arith.constant 0 : index
    %c0_0 = arith.constant 0 : index
    %0 = vector.load %arg1[%c0, %c0_0] : memref<32x32xf32, #tpu.memory_space<vmem>>, vector<32x32xf32>
    %1 = arith.truncf %0 : vector<32x32xf32> to vector<32x32xbf16>
    %c0_1 = arith.constant 0 : index
    %c0_2 = arith.constant 0 : index
    %2 = vector.load %arg2[%c0_1, %c0_2] : memref<32x64xbf16, #tpu.memory_space<vmem>>, vector<32x64xbf16>
    %cst = arith.constant dense<0.000000e+00> : vector<32x64xf32>
    %3 = tpu.matmul %1, %2, %cst {dimension_numbers = #tpu.dot_dimension_numbers<[1], [0], [0], [1], [0, 0, 1, 1], [], []>} : vector<32x32xbf16>, vector<32x64xbf16>, vector<32x64xf32> -> vector<32x64xf32>
    %cst_3 = arith.constant 0.000000e+00 : f32
    %4 = vector.broadcast %cst_3 : f32 to vector<32x64xf32>
    %5 = arith.maximumf %3, %4 : vector<32x64xf32>
    %6 = arith.truncf %5 : vector<32x64xf32> to vector<32x64xbf16>
    %c0_4 = arith.constant 0 : index
    %c0_5 = arith.constant 0 : index
    %7 = vector.load %arg3[%c0_4, %c0_5] : memref<64x32xbf16, #tpu.memory_space<vmem>>, vector<64x32xbf16>
    %cst_6 = arith.constant dense<0.000000e+00> : vector<32x32xf32>
    %8 = tpu.matmul %6, %7, %cst_6 {dimension_numbers = #tpu.dot_dimension_numbers<[1], [0], [0], [1], [0, 0, 1, 1], [], []>} : vector<32x64xbf16>, vector<64x32xbf16>, vector<32x32xf32> -> vector<32x32xf32>
    %9 = arith.addf %0, %8 : vector<32x32xf32>
    %c0_7 = arith.constant 0 : index
    %c0_8 = arith.constant 0 : index
    %10 = vector.load %arg4[%c0_7, %c0_8] : memref<32x32xf32, #tpu.memory_space<vmem>>, vector<32x32xf32>
    tpu.vector_store %arg4[%c0_7, %c0_8], %9 {strides = array<i32>} : memref<32x32xf32, #tpu.memory_space<vmem>>, vector<32x32xf32>,
    return
  }
  func.func @transform_0(%arg0: i32) -> (i32, i32) {
    %c0_i32 = arith.constant 0 : i32
    %c0_i32_0 = arith.constant 0 : i32
    return %arg0, %c0_i32 : i32, i32
  }
  func.func @transform_1(%arg0: i32) -> (i32, i32) {
    %c0_i32 = arith.constant 0 : i32
    %c0_i32_0 = arith.constant 0 : i32
    %c0_i32_1 = arith.constant 0 : i32
    return %c0_i32, %c0_i32_0 : i32, i32
  }
  func.func @transform_2(%arg0: i32) -> (i32, i32) {
    %c0_i32 = arith.constant 0 : i32
    %c0_i32_0 = arith.constant 0 : i32
    %c0_i32_1 = arith.constant 0 : i32
    return %c0_i32, %c0_i32_0 : i32, i32
  }
  func.func @transform_3(%arg0: i32) -> (i32, i32) {
    %c0_i32 = arith.constant 0 : i32
    %c0_i32_0 = arith.constant 0 : i32
    return %arg0, %c0_i32 : i32, i32
  }
}

module attributes {stable_mosaic.version = 11 : i64} {
  func.func @_ln_kernel(%arg0: i32, %arg1: memref<32x32xf32, #tpu.memory_space<vmem>>, %arg2: memref<1x32xf32, #tpu.memory_space<vmem>>, %arg3: memref<1x32xf32, #tpu.memory_space<vmem>>, %arg4: memref<32x32xf32, #tpu.memory_space<vmem>>) attributes {dimension_semantics = [#tpu.dimension_semantics<parallel>], iteration_bounds = array<i64: 1>, scalar_prefetch = 0 : i64, scratch_operands = 0 : i64, tpu.core_type = #tpu.core_type<tc>, window_params = [{transform_indices = @transform_0, window_bounds = array<i64: 32, 32>}, {pipeline_mode = #tpu.pipeline_mode<synchronous>, transform_indices = @transform_1, window_bounds = array<i64: 1, 32>}, {pipeline_mode = #tpu.pipeline_mode<synchronous>, transform_indices = @transform_2, window_bounds = array<i64: 1, 32>}, {transform_indices = @transform_3, window_bounds = array<i64: 32, 32>}]} {
    %c0 = arith.constant 0 : index
    %c0_0 = arith.constant 0 : index
    %0 = vector.load %arg1[%c0, %c0_0] : memref<32x32xf32, #tpu.memory_space<vmem>>, vector<32x32xf32>
    %cst = arith.constant dense<0.000000e+00> : vector<32xf32>
    %1 = vector.multi_reduction <add>, %0, %cst [1] : vector<32x32xf32> to vector<32xf32>
    %2 = vector.shape_cast %1 : vector<32xf32> to vector<32x1xf32>
    %cst_1 = arith.constant 3.200000e+01 : f32
    %3 = vector.broadcast %cst_1 : f32 to vector<32x1xf32>
    %4 = arith.divf %2, %3 : vector<32x1xf32>
    %5 = vector.broadcast %4 : vector<32x1xf32> to vector<32x32xf32>
    %6 = arith.subf %0, %5 : vector<32x32xf32>
    %7 = arith.mulf %6, %6 : vector<32x32xf32>
    %cst_2 = arith.constant dense<0.000000e+00> : vector<32xf32>
    %8 = vector.multi_reduction <add>, %7, %cst_2 [1] : vector<32x32xf32> to vector<32xf32>
    %9 = vector.shape_cast %8 : vector<32xf32> to vector<32x1xf32>
    %cst_3 = arith.constant 3.200000e+01 : f32
    %10 = vector.broadcast %cst_3 : f32 to vector<32x1xf32>
    %11 = arith.divf %9, %10 : vector<32x1xf32>
    %cst_4 = arith.constant 9.99999974E-6 : f32
    %12 = vector.broadcast %cst_4 : f32 to vector<32x1xf32>
    %13 = arith.addf %11, %12 : vector<32x1xf32>
    %14 = math.rsqrt %13 : vector<32x1xf32>
    %15 = vector.broadcast %14 : vector<32x1xf32> to vector<32x32xf32>
    %16 = arith.mulf %6, %15 : vector<32x32xf32>
    %c0_5 = arith.constant 0 : index
    %c0_6 = arith.constant 0 : index
    %17 = vector.load %arg2[%c0_5, %c0_6] : memref<1x32xf32, #tpu.memory_space<vmem>>, vector<1x32xf32>
    %18 = vector.broadcast %17 : vector<1x32xf32> to vector<32x32xf32>
    %19 = arith.mulf %16, %18 : vector<32x32xf32>
    %c0_7 = arith.constant 0 : index
    %c0_8 = arith.constant 0 : index
    %20 = vector.load %arg3[%c0_7, %c0_8] : memref<1x32xf32, #tpu.memory_space<vmem>>, vector<1x32xf32>
    %21 = vector.broadcast %20 : vector<1x32xf32> to vector<32x32xf32>
    %22 = arith.addf %19, %21 : vector<32x32xf32>
    %c0_9 = arith.constant 0 : index
    %c0_10 = arith.constant 0 : index
    %23 = vector.load %arg4[%c0_9, %c0_10] : memref<32x32xf32, #tpu.memory_space<vmem>>, vector<32x32xf32>
    tpu.vector_store %arg4[%c0_9, %c0_10], %22 {strides = array<i32>} : memref<32x32xf32, #tpu.memory_space<vmem>>, vector<32x32xf32>,
    return
  }
  func.func @transform_0(%arg0: i32) -> (i32, i32) {
    %c0_i32 = arith.constant 0 : i32
    %c0_i32_0 = arith.constant 0 : i32
    return %arg0, %c0_i32 : i32, i32
  }
  func.func @transform_1(%arg0: i32) -> (i32, i32) {
    %c0_i32 = arith.constant 0 : i32
    %c0_i32_0 = arith.constant 0 : i32
    %c0_i32_1 = arith.constant 0 : i32
    return %c0_i32, %c0_i32_0 : i32, i32
  }
  func.func @transform_2(%arg0: i32) -> (i32, i32) {
    %c0_i32 = arith.constant 0 : i32
    %c0_i32_0 = arith.constant 0 : i32
    %c0_i32_1 = arith.constant 0 : i32
    return %c0_i32, %c0_i32_0 : i32, i32
  }
  func.func @transform_3(%arg0: i32) -> (i32, i32) {
    %c0_i32 = arith.constant 0 : i32
    %c0_i32_0 = arith.constant 0 : i32
    return %arg0, %c0_i32 : i32, i32
  }
}

module attributes {stable_mosaic.version = 11 : i64} {
  func.func @_decomp_res_mean_kernel(%arg0: i32, %arg1: memref<1x20x32xf32, #tpu.memory_space<vmem>>, %arg2: memref<1x16x32xf32, #tpu.memory_space<vmem>>, %arg3: memref<1x16x32xf32, #tpu.memory_space<vmem>>) attributes {dimension_semantics = [#tpu.dimension_semantics<parallel>], iteration_bounds = array<i64: 2>, scalar_prefetch = 0 : i64, scratch_operands = 0 : i64, tpu.core_type = #tpu.core_type<tc>, window_params = [{transform_indices = @transform_0, window_bounds = array<i64: 1, 20, 32>}, {transform_indices = @transform_1, window_bounds = array<i64: 1, 16, 32>}, {transform_indices = @transform_2, window_bounds = array<i64: 1, 16, 32>}]} {
    %c0 = arith.constant 0 : index
    %c0_0 = arith.constant 0 : index
    %c0_1 = arith.constant 0 : index
    %0 = vector.load %arg1[%c0, %c0_0, %c0_1] : memref<1x20x32xf32, #tpu.memory_space<vmem>>, vector<1x20x32xf32>
    %1 = vector.shape_cast %0 : vector<1x20x32xf32> to vector<20x32xf32>
    %2 = vector.extract_strided_slice %1 {offsets = [0, 0], sizes = [16, 32], strides = [1, 1]} : vector<20x32xf32> to vector<16x32xf32>
    %3 = vector.extract_strided_slice %1 {offsets = [1, 0], sizes = [16, 32], strides = [1, 1]} : vector<20x32xf32> to vector<16x32xf32>
    %4 = arith.addf %2, %3 : vector<16x32xf32>
    %5 = vector.extract_strided_slice %1 {offsets = [2, 0], sizes = [16, 32], strides = [1, 1]} : vector<20x32xf32> to vector<16x32xf32>
    %6 = arith.addf %4, %5 : vector<16x32xf32>
    %7 = vector.extract_strided_slice %1 {offsets = [3, 0], sizes = [16, 32], strides = [1, 1]} : vector<20x32xf32> to vector<16x32xf32>
    %8 = arith.addf %6, %7 : vector<16x32xf32>
    %9 = vector.extract_strided_slice %1 {offsets = [4, 0], sizes = [16, 32], strides = [1, 1]} : vector<20x32xf32> to vector<16x32xf32>
    %10 = arith.addf %8, %9 : vector<16x32xf32>
    %cst = arith.constant 2.000000e-01 : f32
    %11 = vector.broadcast %cst : f32 to vector<16x32xf32>
    %12 = arith.mulf %10, %11 : vector<16x32xf32>
    %c0_2 = arith.constant 0 : index
    %c0_3 = arith.constant 0 : index
    %c0_4 = arith.constant 0 : index
    %13 = vector.load %arg3[%c0_2, %c0_3, %c0_4] : memref<1x16x32xf32, #tpu.memory_space<vmem>>, vector<1x16x32xf32>
    %14 = vector.shape_cast %13 : vector<1x16x32xf32> to vector<16x32xf32>
    %15 = vector.shape_cast %12 : vector<16x32xf32> to vector<1x16x32xf32>
    tpu.vector_store %arg3[%c0_2, %c0_3, %c0_4], %15 {strides = array<i32>} : memref<1x16x32xf32, #tpu.memory_space<vmem>>, vector<1x16x32xf32>,
    %16 = vector.extract_strided_slice %1 {offsets = [2, 0], sizes = [16, 32], strides = [1, 1]} : vector<20x32xf32> to vector<16x32xf32>
    %17 = arith.subf %16, %12 : vector<16x32xf32>
    %c0_5 = arith.constant 0 : index
    %c0_6 = arith.constant 0 : index
    %c0_7 = arith.constant 0 : index
    %18 = vector.load %arg2[%c0_5, %c0_6, %c0_7] : memref<1x16x32xf32, #tpu.memory_space<vmem>>, vector<1x16x32xf32>
    %19 = vector.shape_cast %18 : vector<1x16x32xf32> to vector<16x32xf32>
    %20 = vector.shape_cast %17 : vector<16x32xf32> to vector<1x16x32xf32>
    tpu.vector_store %arg2[%c0_5, %c0_6, %c0_7], %20 {strides = array<i32>} : memref<1x16x32xf32, #tpu.memory_space<vmem>>, vector<1x16x32xf32>,
    return
  }
  func.func @transform_0(%arg0: i32) -> (i32, i32, i32) {
    %c0_i32 = arith.constant 0 : i32
    %c0_i32_0 = arith.constant 0 : i32
    %c0_i32_1 = arith.constant 0 : i32
    return %arg0, %c0_i32, %c0_i32_0 : i32, i32, i32
  }
  func.func @transform_1(%arg0: i32) -> (i32, i32, i32) {
    %c0_i32 = arith.constant 0 : i32
    %c0_i32_0 = arith.constant 0 : i32
    %c0_i32_1 = arith.constant 0 : i32
    return %arg0, %c0_i32, %c0_i32_0 : i32, i32, i32
  }
  func.func @transform_2(%arg0: i32) -> (i32, i32, i32) {
    %c0_i32 = arith.constant 0 : i32
    %c0_i32_0 = arith.constant 0 : i32
    %c0_i32_1 = arith.constant 0 : i32
    return %arg0, %c0_i32, %c0_i32_0 : i32, i32, i32
  }
}

module attributes {stable_mosaic.version = 11 : i64} {
  func.func @_cconv3_kernel(%arg0: i32, %arg1: memref<1x18x32xf32, #tpu.memory_space<vmem>>, %arg2: memref<32x4xbf16, #tpu.memory_space<vmem>>, %arg3: memref<32x4xbf16, #tpu.memory_space<vmem>>, %arg4: memref<32x4xbf16, #tpu.memory_space<vmem>>, %arg5: memref<1x16x4xf32, #tpu.memory_space<vmem>>) attributes {dimension_semantics = [#tpu.dimension_semantics<parallel>], iteration_bounds = array<i64: 2>, scalar_prefetch = 0 : i64, scratch_operands = 0 : i64, tpu.core_type = #tpu.core_type<tc>, window_params = [{transform_indices = @transform_0, window_bounds = array<i64: 1, 18, 32>}, {pipeline_mode = #tpu.pipeline_mode<synchronous>, transform_indices = @transform_1, window_bounds = array<i64: 32, 4>}, {pipeline_mode = #tpu.pipeline_mode<synchronous>, transform_indices = @transform_2, window_bounds = array<i64: 32, 4>}, {pipeline_mode = #tpu.pipeline_mode<synchronous>, transform_indices = @transform_3, window_bounds = array<i64: 32, 4>}, {transform_indices = @transform_4, window_bounds = array<i64: 1, 16, 4>}]} {
    %c0 = arith.constant 0 : index
    %c0_0 = arith.constant 0 : index
    %c0_1 = arith.constant 0 : index
    %0 = vector.load %arg1[%c0, %c0_0, %c0_1] : memref<1x18x32xf32, #tpu.memory_space<vmem>>, vector<1x18x32xf32>
    %1 = vector.shape_cast %0 : vector<1x18x32xf32> to vector<18x32xf32>
    %2 = arith.truncf %1 : vector<18x32xf32> to vector<18x32xbf16>
    %3 = vector.extract_strided_slice %2 {offsets = [0, 0], sizes = [16, 32], strides = [1, 1]} : vector<18x32xbf16> to vector<16x32xbf16>
    %c0_2 = arith.constant 0 : index
    %c0_3 = arith.constant 0 : index
    %4 = vector.load %arg2[%c0_2, %c0_3] : memref<32x4xbf16, #tpu.memory_space<vmem>>, vector<32x4xbf16>
    %cst = arith.constant dense<0.000000e+00> : vector<16x4xf32>
    %5 = tpu.matmul %3, %4, %cst {dimension_numbers = #tpu.dot_dimension_numbers<[1], [0], [0], [1], [0, 0, 1, 1], [], []>} : vector<16x32xbf16>, vector<32x4xbf16>, vector<16x4xf32> -> vector<16x4xf32>
    %6 = vector.extract_strided_slice %2 {offsets = [1, 0], sizes = [16, 32], strides = [1, 1]} : vector<18x32xbf16> to vector<16x32xbf16>
    %c0_4 = arith.constant 0 : index
    %c0_5 = arith.constant 0 : index
    %7 = vector.load %arg3[%c0_4, %c0_5] : memref<32x4xbf16, #tpu.memory_space<vmem>>, vector<32x4xbf16>
    %cst_6 = arith.constant dense<0.000000e+00> : vector<16x4xf32>
    %8 = tpu.matmul %6, %7, %cst_6 {dimension_numbers = #tpu.dot_dimension_numbers<[1], [0], [0], [1], [0, 0, 1, 1], [], []>} : vector<16x32xbf16>, vector<32x4xbf16>, vector<16x4xf32> -> vector<16x4xf32>
    %9 = arith.addf %5, %8 : vector<16x4xf32>
    %10 = vector.extract_strided_slice %2 {offsets = [2, 0], sizes = [16, 32], strides = [1, 1]} : vector<18x32xbf16> to vector<16x32xbf16>
    %c0_7 = arith.constant 0 : index
    %c0_8 = arith.constant 0 : index
    %11 = vector.load %arg4[%c0_7, %c0_8] : memref<32x4xbf16, #tpu.memory_space<vmem>>, vector<32x4xbf16>
    %cst_9 = arith.constant dense<0.000000e+00> : vector<16x4xf32>
    %12 = tpu.matmul %10, %11, %cst_9 {dimension_numbers = #tpu.dot_dimension_numbers<[1], [0], [0], [1], [0, 0, 1, 1], [], []>} : vector<16x32xbf16>, vector<32x4xbf16>, vector<16x4xf32> -> vector<16x4xf32>
    %13 = arith.addf %9, %12 : vector<16x4xf32>
    %c0_10 = arith.constant 0 : index
    %c0_11 = arith.constant 0 : index
    %c0_12 = arith.constant 0 : index
    %14 = vector.load %arg5[%c0_10, %c0_11, %c0_12] : memref<1x16x4xf32, #tpu.memory_space<vmem>>, vector<1x16x4xf32>
    %15 = vector.shape_cast %14 : vector<1x16x4xf32> to vector<16x4xf32>
    %16 = vector.shape_cast %13 : vector<16x4xf32> to vector<1x16x4xf32>
    tpu.vector_store %arg5[%c0_10, %c0_11, %c0_12], %16 {strides = array<i32>} : memref<1x16x4xf32, #tpu.memory_space<vmem>>, vector<1x16x4xf32>,
    return
  }
  func.func @transform_0(%arg0: i32) -> (i32, i32, i32) {
    %c0_i32 = arith.constant 0 : i32
    %c0_i32_0 = arith.constant 0 : i32
    %c0_i32_1 = arith.constant 0 : i32
    return %arg0, %c0_i32, %c0_i32_0 : i32, i32, i32
  }
  func.func @transform_1(%arg0: i32) -> (i32, i32) {
    %c0_i32 = arith.constant 0 : i32
    %c0_i32_0 = arith.constant 0 : i32
    %c0_i32_1 = arith.constant 0 : i32
    return %c0_i32, %c0_i32_0 : i32, i32
  }
  func.func @transform_2(%arg0: i32) -> (i32, i32) {
    %c0_i32 = arith.constant 0 : i32
    %c0_i32_0 = arith.constant 0 : i32
    %c0_i32_1 = arith.constant 0 : i32
    return %c0_i32, %c0_i32_0 : i32, i32
  }
  func.func @transform_3(%arg0: i32) -> (i32, i32) {
    %c0_i32 = arith.constant 0 : i32
    %c0_i32_0 = arith.constant 0 : i32
    %c0_i32_1 = arith.constant 0 : i32
    return %c0_i32, %c0_i32_0 : i32, i32
  }
  func.func @transform_4(%arg0: i32) -> (i32, i32, i32) {
    %c0_i32 = arith.constant 0 : i32
    %c0_i32_0 = arith.constant 0 : i32
    %c0_i32_1 = arith.constant 0 : i32
    return %arg0, %c0_i32, %c0_i32_0 : i32, i32, i32
  }
}

module attributes {stable_mosaic.version = 11 : i64} {
  func.func @_ln_proj_kernel(%arg0: i32, %arg1: memref<32x32xf32, #tpu.memory_space<vmem>>, %arg2: memref<1x32xf32, #tpu.memory_space<vmem>>, %arg3: memref<1x32xf32, #tpu.memory_space<vmem>>, %arg4: memref<32x4xbf16, #tpu.memory_space<vmem>>, %arg5: memref<1x4xf32, #tpu.memory_space<vmem>>, %arg6: memref<32x4xf32, #tpu.memory_space<vmem>>) attributes {dimension_semantics = [#tpu.dimension_semantics<parallel>], iteration_bounds = array<i64: 1>, scalar_prefetch = 0 : i64, scratch_operands = 0 : i64, tpu.core_type = #tpu.core_type<tc>, window_params = [{transform_indices = @transform_0, window_bounds = array<i64: 32, 32>}, {pipeline_mode = #tpu.pipeline_mode<synchronous>, transform_indices = @transform_1, window_bounds = array<i64: 1, 32>}, {pipeline_mode = #tpu.pipeline_mode<synchronous>, transform_indices = @transform_2, window_bounds = array<i64: 1, 32>}, {pipeline_mode = #tpu.pipeline_mode<synchronous>, transform_indices = @transform_3, window_bounds = array<i64: 32, 4>}, {pipeline_mode = #tpu.pipeline_mode<synchronous>, transform_indices = @transform_4, window_bounds = array<i64: 1, 4>}, {transform_indices = @transform_5, window_bounds = array<i64: 32, 4>}]} {
    %c0 = arith.constant 0 : index
    %c0_0 = arith.constant 0 : index
    %0 = vector.load %arg1[%c0, %c0_0] : memref<32x32xf32, #tpu.memory_space<vmem>>, vector<32x32xf32>
    %cst = arith.constant dense<0.000000e+00> : vector<32xf32>
    %1 = vector.multi_reduction <add>, %0, %cst [1] : vector<32x32xf32> to vector<32xf32>
    %2 = vector.shape_cast %1 : vector<32xf32> to vector<32x1xf32>
    %cst_1 = arith.constant 3.200000e+01 : f32
    %3 = vector.broadcast %cst_1 : f32 to vector<32x1xf32>
    %4 = arith.divf %2, %3 : vector<32x1xf32>
    %5 = vector.broadcast %4 : vector<32x1xf32> to vector<32x32xf32>
    %6 = arith.subf %0, %5 : vector<32x32xf32>
    %7 = arith.mulf %6, %6 : vector<32x32xf32>
    %cst_2 = arith.constant dense<0.000000e+00> : vector<32xf32>
    %8 = vector.multi_reduction <add>, %7, %cst_2 [1] : vector<32x32xf32> to vector<32xf32>
    %9 = vector.shape_cast %8 : vector<32xf32> to vector<32x1xf32>
    %cst_3 = arith.constant 3.200000e+01 : f32
    %10 = vector.broadcast %cst_3 : f32 to vector<32x1xf32>
    %11 = arith.divf %9, %10 : vector<32x1xf32>
    %cst_4 = arith.constant 9.99999974E-6 : f32
    %12 = vector.broadcast %cst_4 : f32 to vector<32x1xf32>
    %13 = arith.addf %11, %12 : vector<32x1xf32>
    %14 = math.rsqrt %13 : vector<32x1xf32>
    %15 = vector.broadcast %14 : vector<32x1xf32> to vector<32x32xf32>
    %16 = arith.mulf %6, %15 : vector<32x32xf32>
    %c0_5 = arith.constant 0 : index
    %c0_6 = arith.constant 0 : index
    %17 = vector.load %arg2[%c0_5, %c0_6] : memref<1x32xf32, #tpu.memory_space<vmem>>, vector<1x32xf32>
    %18 = vector.broadcast %17 : vector<1x32xf32> to vector<32x32xf32>
    %19 = arith.mulf %16, %18 : vector<32x32xf32>
    %c0_7 = arith.constant 0 : index
    %c0_8 = arith.constant 0 : index
    %20 = vector.load %arg3[%c0_7, %c0_8] : memref<1x32xf32, #tpu.memory_space<vmem>>, vector<1x32xf32>
    %21 = vector.broadcast %20 : vector<1x32xf32> to vector<32x32xf32>
    %22 = arith.addf %19, %21 : vector<32x32xf32>
    %23 = arith.truncf %22 : vector<32x32xf32> to vector<32x32xbf16>
    %c0_9 = arith.constant 0 : index
    %c0_10 = arith.constant 0 : index
    %24 = vector.load %arg4[%c0_9, %c0_10] : memref<32x4xbf16, #tpu.memory_space<vmem>>, vector<32x4xbf16>
    %cst_11 = arith.constant dense<0.000000e+00> : vector<32x4xf32>
    %25 = tpu.matmul %23, %24, %cst_11 {dimension_numbers = #tpu.dot_dimension_numbers<[1], [0], [0], [1], [0, 0, 1, 1], [], []>} : vector<32x32xbf16>, vector<32x4xbf16>, vector<32x4xf32> -> vector<32x4xf32>
    %c0_12 = arith.constant 0 : index
    %c0_13 = arith.constant 0 : index
    %26 = vector.load %arg5[%c0_12, %c0_13] : memref<1x4xf32, #tpu.memory_space<vmem>>, vector<1x4xf32>
    %27 = vector.broadcast %26 : vector<1x4xf32> to vector<32x4xf32>
    %28 = arith.addf %25, %27 : vector<32x4xf32>
    %c0_14 = arith.constant 0 : index
    %c0_15 = arith.constant 0 : index
    %29 = vector.load %arg6[%c0_14, %c0_15] : memref<32x4xf32, #tpu.memory_space<vmem>>, vector<32x4xf32>
    tpu.vector_store %arg6[%c0_14, %c0_15], %28 {strides = array<i32>} : memref<32x4xf32, #tpu.memory_space<vmem>>, vector<32x4xf32>,
    return
  }
  func.func @transform_0(%arg0: i32) -> (i32, i32) {
    %c0_i32 = arith.constant 0 : i32
    %c0_i32_0 = arith.constant 0 : i32
    return %arg0, %c0_i32 : i32, i32
  }
  func.func @transform_1(%arg0: i32) -> (i32, i32) {
    %c0_i32 = arith.constant 0 : i32
    %c0_i32_0 = arith.constant 0 : i32
    %c0_i32_1 = arith.constant 0 : i32
    return %c0_i32, %c0_i32_0 : i32, i32
  }
  func.func @transform_2(%arg0: i32) -> (i32, i32) {
    %c0_i32 = arith.constant 0 : i32
    %c0_i32_0 = arith.constant 0 : i32
    %c0_i32_1 = arith.constant 0 : i32
    return %c0_i32, %c0_i32_0 : i32, i32
  }
  func.func @transform_3(%arg0: i32) -> (i32, i32) {
    %c0_i32 = arith.constant 0 : i32
    %c0_i32_0 = arith.constant 0 : i32
    %c0_i32_1 = arith.constant 0 : i32
    return %c0_i32, %c0_i32_0 : i32, i32
  }
  func.func @transform_4(%arg0: i32) -> (i32, i32) {
    %c0_i32 = arith.constant 0 : i32
    %c0_i32_0 = arith.constant 0 : i32
    %c0_i32_1 = arith.constant 0 : i32
    return %c0_i32, %c0_i32_0 : i32, i32
  }
  func.func @transform_5(%arg0: i32) -> (i32, i32) {
    %c0_i32 = arith.constant 0 : i32
    %c0_i32_0 = arith.constant 0 : i32
    return %arg0, %c0_i32 : i32, i32
  }
}

</mosaic_0001>

<bundles_post_ra>
// kernel: reverse.9
= control target key start
LH: loop header
LB: loop body
LE: loop exit
PB: predicated region body
PF: predicated region fallthrough
CT: control target
= control target key end

     0   :  { %v2_v0 = vlaneseq  ;;  %s155_s0 = inlined_call_operand.vmem [shape: f32[2,4,7], index: 0, kind: input, shape index: {}]   ;;  %s156_s1 = inlined_call_operand.vmem [shape: f32[2,4,7], index: 1, kind: output, shape index: {}]  }
   0x2   :  { %v3_v1 = vsub.s32 6, %v2_v0 }
   0x4   :  { %4 = vset.pattern.permute.xlu0 %v3_v1 }
   0x5   :  { %v21_v2 = vld [vmem:[%s155_s0] sm:$0xff]  }
   0x6   :  { %22 = vst [vmem:[#allocation1] sm:$0xff] %v21_v2  }
   0xd   :  { %v57_v3 = vld [vmem:[#allocation1] sm:$0xf]  ;;  %v54_v4 = vld [vmem:[#allocation1 + $0x4] sm:$0xf] }
   0xe   :  { %58 = vst [vmem:[#allocation0] sm:$0xf] %v57_v3  ;;  %56 = vst [vmem:[#allocation0 + $0x8] sm:$0xf] %v54_v4 }
  0x15   :  { %v59_v5 = vld [vmem:[#allocation0] sm:$0xff]  ;;  %v65_v6 = vld [vmem:[#allocation0 + $0x8] sm:$0xff] }
  0x16   :  { %60 = vperm.xlu0 %4, %v59_v5  }
  0x1a   :  { %66 = vperm.xlu0 %4, %v65_v6  }
  0x91   :  { %v61_v7 = vpop.permute.xlu0 %60 }
  0x92   :  { %62 = vst [vmem:[#allocation2 + $0x8] sm:$0xff] %v61_v7 }
  0x95   :  { %v67_v8 = vpop.permute.xlu0 %66 }
  0x96   :  { %68 = vst [vmem:[#allocation2] sm:$0xff] %v67_v8 }
  0x99   :  { %v73_v9 = vld [vmem:[#allocation2 + $0x8] sm:$0xf] }
  0x9a   :  { %76 = vst [vmem:[#allocation3] sm:$0xf] %v73_v9 }
  0x9d   :  { %v78_v10 = vld [vmem:[#allocation2] sm:$0xf] }
  0x9e   :  { %82 = vst [vmem:[#allocation3 + $0x4] sm:$0xf] %v78_v10 }
  0xa1   :  { %v99_v11 = vld [vmem:[#allocation3] sm:$0xf] }
  0xa2   :  { %100 = vst [vmem:[%s156_s1] sm:$0xf] %v99_v11 }
  0xa5   :  { %v101_v12 = vld [vmem:[#allocation3 + $0x4] sm:$0xf] }
  0xa6   :  { %102 = vst [vmem:[%s156_s1 + $0x4] sm:$0xf] %v101_v12 }

// kernel: _lambda_.27
= control target key start
LH: loop header
LB: loop body
LE: loop exit
PB: predicated region body
PF: predicated region fallthrough
CT: control target
= control target key end

     0   :  { %s359_s9 = smov 0   ;;  %s392_s0 = inlined_call_operand.vmem [shape: f32[2,20,4], index: 0, kind: input, shape index: {}]   ;;  %s393_s1 = inlined_call_operand.vmem [shape: f32[2,16,4], index: 1, kind: output, shape index: {0}]   ;;  %s394_s2 = inlined_call_operand.vmem [shape: f32[2,16,4], index: 2, kind: output, shape index: {1}]  }
   0x1 LB: > { %s313_s10 = sadd.s32 4294967295, %s342_s9   ;;  %p317_p0 = scmp.ge.s32.totalorder %s342_s9, 1  ;;  %s342_s9 = sphi %s359_s9, %s13_s9  }
   0x2   : > { %p115_p1 = scmp.lt.s32.totalorder %s342_s9, 3 }
   0x4   : > { %p116_p2 = pnand %p317_p0, %p115_p1 }
   0x5   : > { %p142_p3 = scmp.lt.s32.totalorder (!%p116_p2), %s313_s10, 1 }
   0x6   : > { %119 = sbr.rel (%p116_p2) target bundleno = 36 (0x24), region = 24 }
   0xb   : > { %s396_s10 = smov (!%p142_p3, %s313_s10), 1  ;;  %vm163_vm0 = vcmask 1046528   ;;  %vm173_vm1 = vcmask 1045504   ;;  %vm183_vm2 = vcmask 1044480   ;;  %vm193_vm3 = vcmask 1043456  }
   0xc   : > { %s327_s11 = smul.u32 24, %s396_s10  ;;  %s325_s15 = sshll.u32 %s396_s10, 4  ;;  %vm205_vm4 = vcmask 31744   ;;  %vm210_vm5 = vcmask 1041408   ;;  %vm220_vm6 = vcmask 31746   ;;  %vm223_vm7 = vcmask 25600  }
   0xd   : > { %s156_s18 = scalar_lea.vmem %s394_s2, %s325_s15  ;;  %s151_s21 = scalar_lea.vmem %s393_s1, %s325_s15 }
   0xe   : > { %s146_s14 = scalar_lea.vmem %s392_s0, %s327_s11 }
   0xf   : > { %v157_v0 = vld [vmem:[%s146_s14] sm:$0xff]  ;;  %v158_v1 = vld [vmem:[%s146_s14 + $0x8] sm:$0xff]  ;;  %v159_v2 = vld [vmem:[%s146_s14 + $0x10] sm:$0xf] }
  0x10   : > { %v164_v3 = vrot.slane %v157_v0, 1  ;;  %v165_v4 = vrot.slane %v158_v1, 1  ;;  %v167_v5 = vrot.slane %v159_v2, 1  ;;  %v174_v6 = vrot.slane %v157_v0, 2 }
  0x11   : > { %v175_v7 = vrot.slane %v158_v1, 2  ;;  %v184_v8 = vrot.slane %v157_v0, 3  ;;  %v185_v9 = vrot.slane %v158_v1, 3  ;;  %v194_v10 = vrot.slane %v157_v0, 4 }
  0x12   : > { %v166_v11 = vsel %vm163_vm0, %v164_v3, %v165_v4  ;;  %v195_v12 = vrot.slane %v158_v1, 4  ;;  %v168_v13 = vsel %vm163_vm0, %v165_v4, %v167_v5  ;;  %v177_v14 = vrot.slane %v159_v2, 2 }
  0x13   : > { %v171_v15 = vadd.f32 %v166_v11, %v157_v0  ;;  %v176_v16 = vsel %vm173_vm1, %v174_v6, %v175_v7  ;;  %v172_v17 = vadd.f32 %v168_v13, %v158_v1  ;;  %v186_v18 = vsel %vm183_vm2, %v184_v8, %v185_v9 }
  0x14   : > { %v178_v19 = vsel %vm173_vm1, %v175_v7, %v177_v14  ;;  %v187_v20 = vrot.slane %v159_v2, 3  ;;  %v197_v21 = vrot.slane %v159_v2, 4  ;;  %v196_v24 = vsel %vm193_vm3, %v194_v10, %v195_v12 }
  0x15   : > { %v181_v22 = vadd.f32 %v176_v16, %v171_v15  ;;  %v182_v23 = vadd.f32 %v178_v19, %v172_v17 }
  0x16   : > { %v188_v25 = vsel %vm183_vm2, %v185_v9, %v187_v20  ;;  %v198_v26 = vsel %vm193_vm3, %v195_v12, %v197_v21 }
  0x17   : > { %v191_v27 = vadd.f32 %v186_v18, %v181_v22  ;;  %v192_v28 = vadd.f32 %v188_v25, %v182_v23 }
  0x19   : > { %v201_v29 = vadd.f32 %v196_v24, %v191_v27  ;;  %v202_v30 = vadd.f32 %v198_v26, %v192_v28 }
  0x1b   : > { %v203_v31 = vmul.f32 0.2, %v201_v29  ;;  %v204_v32 = vmul.f32 0.2, %v202_v30 }
  0x1d   : > { %206 = vst.msk [vmem:[%s156_s18] sm:$0xff] %vm205_vm4, %v203_v31  ;;  %207 = vst.msk [vmem:[%s156_s18 + $0x8] sm:$0xff] %vm205_vm4, %v204_v32  ;;  %v212_v33 = vrot.slane %v204_v32, 6  ;;  %v211_v34 = vrot.slane %v203_v31, 6 }
  0x1f   : > { %v217_v35 = vsub.f32 %v157_v0, %v211_v34  ;;  %v213_v36 = vsel %vm210_vm5, %v211_v34, %v212_v33  ;;  %v219_v37 = vsub.f32 %v159_v2, %v212_v33 }
  0x20   : > { %v218_v38 = vsub.f32 %v158_v1, %v213_v36 }
  0x21   : > { %221 = vst.msk [vmem:[%s151_s21 - $0x2] sm:$0xfc] %vm220_vm6, %v217_v35 }
  0x22   : > { %224 = vst.msk [vmem:[%s151_s21 + $0xe] sm:$0x3] %vm223_vm7, %v219_v37 }
  0x23   : > { %222 = vst.msk [vmem:[%s151_s21 + $0x6] sm:$0xff] %vm205_vm4, %v218_v38 }
  0x24 PF: > { %s13_s9 = sadd.s32 1, %s342_s9  }
  0x25   : > { %p10_p4 = scmp.ge.s32.totalorder %s13_s9, 4  }
  0x27   :  { %12 = sbr.rel (!%p10_p4) target bundleno = 1 (0x1), region = 66 }

// kernel: _lambda_.39
= control target key start
LH: loop header
LB: loop body
LE: loop exit
PB: predicated region body
PF: predicated region fallthrough
CT: control target
= control target key end

     0   :  { %s673_s21 = smov 0   ;;  %s725_s0 = inlined_call_operand.vmem [shape: f32[2,18,4], index: 0, kind: input, shape index: {}]   ;;  %s726_s1 = inlined_call_operand.vmem [shape: f32[2,16,4], index: 1, kind: input, shape index: {}]   ;;  %s727_s2 = inlined_call_operand.vmem [shape: bf16[4,32], index: 2, kind: input, shape index: {}]   ;;  %s728_s3 = inlined_call_operand.vmem [shape: bf16[4,32], index: 3, kind: input, shape index: {}]   ;;  %s729_s4 = inlined_call_operand.vmem [shape: bf16[4,32], index: 4, kind: input, shape index: {}]   ;;  %s730_s5 = inlined_call_operand.vmem [shape: bf16[4,32], index: 5, kind: input, shape index: {}]   ;;  %s731_s6 = inlined_call_operand.vmem [shape: f32[2,16,32], index: 6, kind: output, shape index: {}]  }
   0x1 LB: > { %s567_s22 = sadd.s32 4294967295, %s634_s21   ;;  %p571_p0 = scmp.ge.s32.totalorder %s634_s21, 1  ;;  %s634_s21 = sphi %s673_s21, %s16_s21  }
   0x2   : > { %p222_p1 = scmp.lt.s32.totalorder %s634_s21, 3 }
   0x4   : > { %p223_p2 = pnand %p571_p0, %p222_p1 }
   0x5   : > { %p257_p3 = scmp.lt.s32.totalorder (!%p223_p2), %s567_s22, 1 }
   0x6   : > { %226 = sbr.rel (%p223_p2) target bundleno = 235 (0xeb), region = 44 }
   0xb   : > { %v281_v0 = vld [vmem:[%s727_s2] sm:$0x3]  ;;  %vm300_vm0 = vcmask 1041408   ;;  %v636_v1 = vmov 0.0   ;;  %vm637_vm1 = vmmov 0   ;;  %s733_s22 = smov (!%p257_p3, %s567_s22), 1 }
   0xc   : > { %599 = vmatprep.subr.bf16.mxu1 %v636_v1  ;;  %v348_v2 = vsel %vm300_vm0, %v281_v0, 0  ;;  %593 = vmatprep.subr.bf16.mxu0 %v636_v1  ;;  %v282_v3 = vld [vmem:[%s728_s3] sm:$0x3]  ;;  %s617_s27 = smul.u32 24, %s733_s22  ;;  %s583_s30 = sshll.u32 %s733_s22, 4  ;;  %vm296_vm2 = vcmask 31744  }
   0xd   : > { %600 = vmatpush3.bf16.msra.mxu1 %v348_v2  ;;  %601 = vmatprep.mubr.msk.bf16.mxu1 %vm637_vm1, %v636_v1  ;;  %v302_v4 = vsel %vm300_vm0, %v282_v3, 0  ;;  %v447_v5 = vld [vmem:[%s730_s5] sm:$0x3]  ;;  %s266_s12 = scalar_lea.vmem %s726_s1, %s583_s30  ;;  %vm283_vm3 = vsmask.f32 7424  ;;  %vm394_vm4 = vcmask 1046528   ;;  %s271_s17 = scalar_lea.vmem %s731_s6, %s583_s30 }
   0xe   : > { %594 = vmatpush3.bf16.msra.mxu0 %v302_v4  ;;  %595 = vmatprep.mubr.msk.bf16.mxu0 %vm637_vm1, %v636_v1  ;;  %s261_s9 = scalar_lea.vmem %s725_s0, %s617_s27  ;;  %v452_v11 = vsel %vm300_vm0, %v447_v5, 0  ;;  %v278_v15 = vld [vmem:[%s266_s12] sm:$0xff]  ;;  %v279_v16 = vld [vmem:[%s266_s12 + $0x8] sm:$0xff]  ;;  %vm497_vm5 = vcmask 261120  }
   0xf   : > { %605 = vmatprep.subr.bf16.mxu0 %v636_v1  ;;  %611 = vmatprep.subr.bf16.mxu1 %v636_v1  ;;  %v273_v6 = vld [vmem:[%s261_s9] sm:$0xff]  ;;  %v274_v7 = vld [vmem:[%s261_s9 + $0x8] sm:$0xff]  ;;  %v275_v8 = vld [vmem:[%s261_s9 + $0x10] sm:$0x3]  ;;  %v280_v21 = vpack.c.bf16 %v279_v16, %v278_v15 }
  0x10   : > { %v276_v9 = vpack.c.bf16 %v274_v7, %v273_v6  ;;  %v277_v10 = vpack.c.bf16 %v275_v8, %v275_v8  ;;  %v391_v19 = vld [vmem:[%s729_s4] sm:$0x3] }
  0x11   : > { %v402_v22 = vsel %vm300_vm0, %v391_v19, 0 }
  0x12   : > { %602 = vmatmul.mubr.msk.bf16.vlgmr.msra.gmra.mxu1 %vm296_vm2, %v276_v9  ;;  %v285_v12 = vshrl.u32 %v276_v9, 16  ;;  %v287_v13 = vshll.u32 %v276_v9, 16  ;;  %v292_v14 = vshll.u32 %v277_v10, 16  ;;  %v395_v24 = vrot.slane %v276_v9, 1 }
  0x13   : > { %612 = vmatpush3.bf16.msra.mxu1 %v452_v11  ;;  %613 = vmatprep.mubr.msk.bf16.mxu1 %vm637_vm1, %v636_v1  ;;  %v396_v25 = vrot.slane %v277_v10, 1 }
  0x14   : > { %v289_v17 = vrot.slane %v287_v13, 1  ;;  %v294_v18 = vrot.slane %v292_v14, 1 }
  0x15   : > { %v397_v26 = vsel %vm394_vm4, %v395_v24, %v396_v25 }
  0x16   : > { %v290_v20 = vor.u32 %v289_v17, %v285_v12 }
  0x18   : > { %v295_v23 = vsel %vm283_vm3, %v290_v20, %v294_v18 }
  0x19   : > { %596 = vmatmul.mubr.msk.bf16.vlgmr.msra.gmra.mxu0 %vm296_vm2, %v295_v23 }
  0x1a   : > { %606 = vmatpush3.bf16.msra.mxu0 %v402_v22  ;;  %614 = vmatmul.mubr.msk.bf16.vlgmr.msra.gmra.mxu1 %vm296_vm2, %v280_v21 }
  0x1b   : > { %607 = vmatprep.mubr.msk.bf16.mxu0 %vm637_vm1, %v636_v1 }
  0x21   : > { %608 = vmatmul.mubr.msk.bf16.vlgmr.msra.gmra.mxu0 %vm296_vm2, %v397_v26 }
  0xd2   : > { %v384_v27 = vpop.f32.mrf.mxu1 }
  0xd4   : > { %v603_v28 = vpop.f32.mrf.mxu1 }
  0xd6   : > { %v387_v29 = vpop.f32.mrf.mxu1 }
  0xd8   : > { %v604_v30 = vpop.f32.mrf.mxu1 }
  0xd9   : > { %v338_v31 = vpop.f32.mrf.mxu0 }
  0xda   : > { %v488_v32 = vpop.f32.mrf.mxu1  ;;  %v385_v38 = vadd.f32 %v384_v27, %v338_v31 }
  0xdb   : > { %v597_v33 = vpop.f32.mrf.mxu0 }
  0xdc   : > { %v615_v34 = vpop.f32.mrf.mxu1 }
  0xdd   : > { %v341_v35 = vpop.f32.mrf.mxu0 }
  0xde   : > { %v491_v36 = vpop.f32.mrf.mxu1  ;;  %v388_v43 = vadd.f32 %v387_v29, %v341_v35 }
  0xdf   : > { %v598_v37 = vpop.f32.mrf.mxu0 }
  0xe0   : > { %v616_v39 = vpop.f32.mrf.mxu1 }
  0xe1   : > { %v438_v40 = vpop.f32.mrf.mxu0 }
  0xe2   : > { %v445_v41 = vadd.f32 %v438_v40, %v385_v38 }
  0xe3   : > { %v609_v42 = vpop.f32.mrf.mxu0 }
  0xe4   : > { %v495_v44 = vadd.f32 %v488_v32, %v445_v41 }
  0xe5   : > { %v441_v45 = vpop.f32.mrf.mxu0 }
  0xe6   : > { %498 = vst.msk [vmem:[%s271_s17] sm:$0xff] %vm497_vm5, %v495_v44  ;;  %v446_v46 = vadd.f32 %v441_v45, %v388_v43 }
  0xe7   : > { %v610_v47 = vpop.f32.mrf.mxu0 }
  0xe8   : > { %v496_v48 = vadd.f32 %v491_v36, %v446_v46 }
  0xea   : > { %499 = vst.msk [vmem:[%s271_s17 + $0x8] sm:$0xff] %vm497_vm5, %v496_v48 }
  0xeb PF: > { %s16_s21 = sadd.s32 1, %s634_s21  }
  0xec   : > { %p13_p4 = scmp.ge.s32.totalorder %s16_s21, 4  }
  0xee   :  { %15 = sbr.rel (!%p13_p4) target bundleno = 1 (0x1), region = 77 }

// kernel: _lambda_.40
= control target key start
LH: loop header
LB: loop body
LE: loop exit
PB: predicated region body
PF: predicated region fallthrough
CT: control target
= control target key end

     0   :  { %vm19_vm0 = vcmask 261120   ;;  %v160_v1 = vmov 0.0   ;;  %s228_s1 = inlined_call_operand.vmem [shape: bf16[32,32], index: 1, kind: input, shape index: {}]   ;;  %s229_s0 = inlined_call_operand.vmem [shape: f32[32,32], index: 0, kind: input, shape index: {}]   ;;  %s230_s2 = inlined_call_operand.vmem [shape: f32[1,32], index: 2, kind: input, shape index: {}]   ;;  %s231_s3 = inlined_call_operand.vmem [shape: f32[32,32], index: 3, kind: output, shape index: {}]  }
   0x1   :  { %v158_v0 = vld [vmem:[%s228_s1 + $0x8] sm:$0xff]   ;;  %22 = vst.msk [vmem:[#allocation2 + $0x10] sm:$0xff] %vm19_vm0, %v160_v1  ;;  %20 = vst.msk [vmem:[#allocation2] sm:$0xff] %vm19_vm0, %v160_v1  ;;  %v159_v2 = vld [vmem:[%s228_s1] sm:$0xff]  }
   0x2   :  { %21 = vst.msk [vmem:[#allocation2 + $0x8] sm:$0xff] %vm19_vm0, %v160_v1  ;;  %23 = vst.msk [vmem:[#allocation2 + $0x18] sm:$0xff] %vm19_vm0, %v160_v1  ;;  %149 = vmatprep.subr.bf16.mxu0 %v158_v0  ;;  %v28_v3 = vld [vmem:[%s229_s0] sm:$0xff]  ;;  %v29_v4 = vld [vmem:[%s229_s0 + $0x8] sm:$0xff] }
   0x3   :  { %150 = vmatpush3.bf16.msra.mxu0 %v158_v0  ;;  %v32_v5 = vpack.c.bf16 %v29_v4, %v28_v3  ;;  %v30_v6 = vld [vmem:[%s229_s0 + $0x10] sm:$0xff]  ;;  %v31_v7 = vld [vmem:[%s229_s0 + $0x18] sm:$0xff]  ;;  %v144_v21 = vld [vmem:[%s230_s2] ss:$0 sm:$0xff] }
   0x4   :  { %151 = vmatprep.subr.bf16.mxu0 %v159_v2  ;;  %v33_v8 = vpack.c.bf16 %v31_v7, %v30_v6 }
   0x5   :  { %153 = vmatprep.mubr.msk.bf16.mxu0 %vm19_vm0, %v32_v5 }
   0x7   :  { %152 = vmatpush3.bf16.msra.mxu0 %v159_v2 }
   0x8   :  { %v26_v9 = vld [vmem:[#allocation2 + $0x10] sm:$0xff]  ;;  %v24_v11 = vld [vmem:[#allocation2] sm:$0xff] }
   0x9   :  { %v27_v14 = vld [vmem:[#allocation2 + $0x18] sm:$0xff]  ;;  %v25_v17 = vld [vmem:[#allocation2 + $0x8] sm:$0xff] }
   0xa   :  { %154 = vmatmul.mubr.msk.bf16.vlgmr.msra.gmra.mxu0 %vm19_vm0, %v33_v8 }
  0xca   :  { %v155_v10 = vpop.f32.mrf.mxu0 }
  0xcb   :  { %v108_v12 = vadd.f32 %v155_v10, %v26_v9 }
  0xcc   :  { %v91_v13 = vpop.f32.mrf.mxu0 }
  0xcd   :  { %112 = vst.msk [vmem:[#allocation2 + $0x10] sm:$0xff] %vm19_vm0, %v108_v12  ;;  %v106_v15 = vadd.f32 %v91_v13, %v24_v11 }
  0xce   :  { %v156_v16 = vpop.f32.mrf.mxu0 }
  0xcf   :  { %110 = vst.msk [vmem:[#allocation2] sm:$0xff] %vm19_vm0, %v106_v15  ;;  %v109_v18 = vadd.f32 %v156_v16, %v27_v14 }
  0xd0   :  { %v94_v19 = vpop.f32.mrf.mxu0 }
  0xd1   :  { %113 = vst.msk [vmem:[#allocation2 + $0x18] sm:$0xff] %vm19_vm0, %v109_v18  ;;  %v107_v20 = vadd.f32 %v94_v19, %v25_v17 }
  0xd3   :  { %111 = vst.msk [vmem:[#allocation2 + $0x8] sm:$0xff] %vm19_vm0, %v107_v20 }
  0xd4   :  { %v119_v22 = vld [vmem:[#allocation2 + $0x10] sm:$0xff] }
  0xd5   :  { %v130_v23 = vadd.f32 %v144_v21, %v119_v22 }
  0xd6   :  { %v117_v24 = vld [vmem:[#allocation2] sm:$0xff] }
  0xd7   :  { %134 = vst.msk [vmem:[%s231_s3 + $0x10] sm:$0xff] %vm19_vm0, %v130_v23  ;;  %v128_v25 = vadd.f32 %v144_v21, %v117_v24 }
  0xd8   :  { %v120_v26 = vld [vmem:[#allocation2 + $0x18] sm:$0xff] }
  0xd9   :  { %132 = vst.msk [vmem:[%s231_s3] sm:$0xff] %vm19_vm0, %v128_v25  ;;  %v131_v27 = vadd.f32 %v144_v21, %v120_v26 }
  0xda   :  { %v118_v28 = vld [vmem:[#allocation2 + $0x8] sm:$0xff] }
  0xdb   :  { %135 = vst.msk [vmem:[%s231_s3 + $0x18] sm:$0xff] %vm19_vm0, %v131_v27  ;;  %v129_v29 = vadd.f32 %v144_v21, %v118_v28 }
  0xdd   :  { %133 = vst.msk [vmem:[%s231_s3 + $0x8] sm:$0xff] %vm19_vm0, %v129_v29 }

// kernel: _lambda_.41
= control target key start
LH: loop header
LB: loop body
LE: loop exit
PB: predicated region body
PF: predicated region fallthrough
CT: control target
= control target key end

     0   :  { %vm22_vm0 = vcmask 261120   ;;  %v171_v1 = vmov 0.0   ;;  %s256_s1 = inlined_call_operand.vmem [shape: bf16[32,32], index: 1, kind: input, shape index: {}]   ;;  %s257_s0 = inlined_call_operand.vmem [shape: f32[32,32], index: 0, kind: input, shape index: {}]   ;;  %s258_s2 = inlined_call_operand.vmem [shape: f32[1,32], index: 2, kind: input, shape index: {}]   ;;  %s259_s3 = inlined_call_operand.vmem [shape: f32[32,32], index: 3, kind: input, shape index: {}]   ;;  %s260_s4 = inlined_call_operand.vmem [shape: f32[32,32], index: 4, kind: output, shape index: {}]  }
   0x1   :  { %v169_v0 = vld [vmem:[%s256_s1 + $0x8] sm:$0xff]   ;;  %25 = vst.msk [vmem:[#allocation2 + $0x10] sm:$0xff] %vm22_vm0, %v171_v1  ;;  %23 = vst.msk [vmem:[#allocation2] sm:$0xff] %vm22_vm0, %v171_v1  ;;  %v170_v2 = vld [vmem:[%s256_s1] sm:$0xff]  }
   0x2   :  { %24 = vst.msk [vmem:[#allocation2 + $0x8] sm:$0xff] %vm22_vm0, %v171_v1  ;;  %26 = vst.msk [vmem:[#allocation2 + $0x18] sm:$0xff] %vm22_vm0, %v171_v1  ;;  %160 = vmatprep.subr.bf16.mxu0 %v169_v0  ;;  %v31_v3 = vld [vmem:[%s257_s0] sm:$0xff]  ;;  %v32_v4 = vld [vmem:[%s257_s0 + $0x8] sm:$0xff] }
   0x3   :  { %161 = vmatpush3.bf16.msra.mxu0 %v169_v0  ;;  %v35_v5 = vpack.c.bf16 %v32_v4, %v31_v3  ;;  %v33_v6 = vld [vmem:[%s257_s0 + $0x10] sm:$0xff]  ;;  %v34_v7 = vld [vmem:[%s257_s0 + $0x18] sm:$0xff]  ;;  %v155_v21 = vld [vmem:[%s258_s2] ss:$0 sm:$0xff] }
   0x4   :  { %162 = vmatprep.subr.bf16.mxu0 %v170_v2  ;;  %v36_v8 = vpack.c.bf16 %v34_v7, %v33_v6  ;;  %v137_v23 = vld [vmem:[%s259_s3 + $0x10] sm:$0xff]  ;;  %v135_v26 = vld [vmem:[%s259_s3] sm:$0xff]  ;;  %v138_v30 = vld [vmem:[%s259_s3 + $0x18] sm:$0xff] }
   0x5   :  { %164 = vmatprep.mubr.msk.bf16.mxu0 %vm22_vm0, %v35_v5  ;;  %v136_v34 = vld [vmem:[%s259_s3 + $0x8] sm:$0xff] }
   0x7   :  { %163 = vmatpush3.bf16.msra.mxu0 %v170_v2 }
   0x8   :  { %v29_v9 = vld [vmem:[#allocation2 + $0x10] sm:$0xff]  ;;  %v27_v11 = vld [vmem:[#allocation2] sm:$0xff] }
   0x9   :  { %v30_v14 = vld [vmem:[#allocation2 + $0x18] sm:$0xff]  ;;  %v28_v17 = vld [vmem:[#allocation2 + $0x8] sm:$0xff] }
   0xa   :  { %165 = vmatmul.mubr.msk.bf16.vlgmr.msra.gmra.mxu0 %vm22_vm0, %v36_v8 }
  0xca   :  { %v166_v10 = vpop.f32.mrf.mxu0 }
  0xcb   :  { %v111_v12 = vadd.f32 %v166_v10, %v29_v9 }
  0xcc   :  { %v94_v13 = vpop.f32.mrf.mxu0 }
  0xcd   :  { %115 = vst.msk [vmem:[#allocation2 + $0x10] sm:$0xff] %vm22_vm0, %v111_v12  ;;  %v109_v15 = vadd.f32 %v94_v13, %v27_v11 }
  0xce   :  { %v167_v16 = vpop.f32.mrf.mxu0 }
  0xcf   :  { %113 = vst.msk [vmem:[#allocation2] sm:$0xff] %vm22_vm0, %v109_v15  ;;  %v112_v18 = vadd.f32 %v167_v16, %v30_v14 }
  0xd0   :  { %v97_v19 = vpop.f32.mrf.mxu0 }
  0xd1   :  { %116 = vst.msk [vmem:[#allocation2 + $0x18] sm:$0xff] %vm22_vm0, %v112_v18  ;;  %v110_v20 = vadd.f32 %v97_v19, %v28_v17 }
  0xd3   :  { %114 = vst.msk [vmem:[#allocation2 + $0x8] sm:$0xff] %vm22_vm0, %v110_v20 }
  0xd4   :  { %v122_v22 = vld [vmem:[#allocation2 + $0x10] sm:$0xff] }
  0xd5   :  { %v133_v24 = vadd.f32 %v155_v21, %v122_v22 }
  0xd6   :  { %v120_v25 = vld [vmem:[#allocation2] sm:$0xff] }
  0xd7   :  { %v141_v27 = vadd.f32 %v137_v23, %v133_v24  ;;  %v131_v28 = vadd.f32 %v155_v21, %v120_v25 }
  0xd8   :  { %v123_v29 = vld [vmem:[#allocation2 + $0x18] sm:$0xff] }
  0xd9   :  { %145 = vst.msk [vmem:[%s260_s4 + $0x10] sm:$0xff] %vm22_vm0, %v141_v27  ;;  %v139_v31 = vadd.f32 %v135_v26, %v131_v28  ;;  %v134_v32 = vadd.f32 %v155_v21, %v123_v29 }
  0xda   :  { %v121_v33 = vld [vmem:[#allocation2 + $0x8] sm:$0xff] }
  0xdb   :  { %143 = vst.msk [vmem:[%s260_s4] sm:$0xff] %vm22_vm0, %v139_v31  ;;  %v142_v35 = vadd.f32 %v138_v30, %v134_v32  ;;  %v132_v36 = vadd.f32 %v155_v21, %v121_v33 }
  0xdd   :  { %146 = vst.msk [vmem:[%s260_s4 + $0x18] sm:$0xff] %vm22_vm0, %v142_v35  ;;  %v140_v37 = vadd.f32 %v136_v34, %v132_v36 }
  0xdf   :  { %144 = vst.msk [vmem:[%s260_s4 + $0x8] sm:$0xff] %vm22_vm0, %v140_v37 }

// kernel: _lambda_.42
= control target key start
LH: loop header
LB: loop body
LE: loop exit
PB: predicated region body
PF: predicated region fallthrough
CT: control target
= control target key end

     0   :  { %s276_s6 = smov 0   ;;  %s303_s0 = inlined_call_operand.vmem [shape: f32[2,20,32], index: 0, kind: input, shape index: {}]   ;;  %s304_s1 = inlined_call_operand.vmem [shape: f32[2,16,32], index: 1, kind: output, shape index: {}]  }
   0x1 LB: > { %s238_s7 = sadd.s32 4294967295, %s264_s6   ;;  %p242_p0 = scmp.ge.s32.totalorder %s264_s6, 1  ;;  %s264_s6 = sphi %s276_s6, %s11_s6  }
   0x2   : > { %p87_p1 = scmp.lt.s32.totalorder %s264_s6, 3 }
   0x4   : > { %p88_p2 = pnand %p242_p0, %p87_p1 }
   0x5   : > { %p107_p3 = scmp.lt.s32.totalorder (!%p88_p2), %s238_s7, 1 }
   0x6   : > { %91 = sbr.rel (%p88_p2) target bundleno = 37 (0x25), region = 24 }
   0xb   : > { %s306_s7 = smov (!%p107_p3, %s238_s7), 1  ;;  %vm123_vm0 = vcmask 1046528   ;;  %vm133_vm1 = vcmask 1045504   ;;  %vm143_vm2 = vcmask 1044480   ;;  %vm153_vm3 = vcmask 1043456  }
   0xc   : > { %s249_s8 = smul.u32 24, %s306_s7  ;;  %s248_s12 = sshll.u32 %s306_s7, 4  ;;  %vm177_vm4 = vcmask 261122   ;;  %vm167_vm5 = vcmask 1041408   ;;  %vm181_vm6 = vcmask 254976   ;;  %vm179_vm7 = vcmask 261120  }
   0xd   : > { %s116_s15 = scalar_lea.vmem %s304_s1, %s248_s12 }
   0xe   : > { %s111_s11 = scalar_lea.vmem %s303_s0, %s249_s8 }
   0xf   : > { %v117_v0 = vld [vmem:[%s111_s11] sm:$0xff]  ;;  %v118_v1 = vld [vmem:[%s111_s11 + $0x8] sm:$0xff]  ;;  %v119_v2 = vld [vmem:[%s111_s11 + $0x10] sm:$0xf] }
  0x10   : > { %v124_v3 = vrot.slane %v117_v0, 1  ;;  %v125_v4 = vrot.slane %v118_v1, 1  ;;  %v127_v5 = vrot.slane %v119_v2, 1  ;;  %v134_v6 = vrot.slane %v117_v0, 2 }
  0x11   : > { %v135_v7 = vrot.slane %v118_v1, 2  ;;  %v137_v8 = vrot.slane %v119_v2, 2  ;;  %v144_v9 = vrot.slane %v117_v0, 3  ;;  %v145_v10 = vrot.slane %v118_v1, 3 }
  0x12   : > { %v126_v11 = vsel %vm123_vm0, %v124_v3, %v125_v4  ;;  %v147_v12 = vrot.slane %v119_v2, 3  ;;  %v154_v13 = vrot.slane %v117_v0, 4  ;;  %v155_v14 = vrot.slane %v118_v1, 4 }
  0x13   : > { %v131_v15 = vadd.f32 %v126_v11, %v117_v0  ;;  %v136_v16 = vsel %vm133_vm1, %v134_v6, %v135_v7  ;;  %v146_v17 = vsel %vm143_vm2, %v144_v9, %v145_v10  ;;  %v157_v18 = vrot.slane %v119_v2, 4 }
  0x14   : > { %v128_v19 = vsel %vm123_vm0, %v125_v4, %v127_v5  ;;  %v138_v20 = vsel %vm133_vm1, %v135_v7, %v137_v8  ;;  %v156_v23 = vsel %vm153_vm3, %v154_v13, %v155_v14  ;;  %v148_v24 = vsel %vm143_vm2, %v145_v10, %v147_v12 }
  0x15   : > { %v141_v21 = vadd.f32 %v136_v16, %v131_v15  ;;  %v132_v22 = vadd.f32 %v128_v19, %v118_v1  ;;  %v158_v27 = vsel %vm153_vm3, %v155_v14, %v157_v18 }
  0x17   : > { %v151_v25 = vadd.f32 %v146_v17, %v141_v21  ;;  %v142_v26 = vadd.f32 %v138_v20, %v132_v22 }
  0x19   : > { %v161_v28 = vadd.f32 %v156_v23, %v151_v25  ;;  %v152_v29 = vadd.f32 %v148_v24, %v142_v26 }
  0x1b   : > { %v163_v30 = vmul.f32 0.2, %v161_v28  ;;  %v162_v31 = vadd.f32 %v158_v27, %v152_v29 }
  0x1d   : > { %v168_v32 = vrot.slane %v163_v30, 6  ;;  %v164_v33 = vmul.f32 0.2, %v162_v31 }
  0x1f   : > { %v174_v34 = vsub.f32 %v117_v0, %v168_v32  ;;  %v169_v35 = vrot.slane %v164_v33, 6 }
  0x21   : > { %178 = vst.msk [vmem:[%s116_s15 - $0x2] sm:$0xfc] %vm177_vm4, %v174_v34  ;;  %v170_v36 = vsel %vm167_vm5, %v168_v32, %v169_v35  ;;  %v176_v37 = vsub.f32 %v119_v2, %v169_v35 }
  0x22   : > { %v175_v38 = vsub.f32 %v118_v1, %v170_v36 }
  0x23   : > { %182 = vst.msk [vmem:[%s116_s15 + $0xe] sm:$0x3] %vm181_vm6, %v176_v37 }
  0x24   : > { %180 = vst.msk [vmem:[%s116_s15 + $0x6] sm:$0xff] %vm179_vm7, %v175_v38 }
  0x25 PF: > { %s11_s6 = sadd.s32 1, %s264_s6  }
  0x26   : > { %p8_p4 = scmp.ge.s32.totalorder %s11_s6, 4  }
  0x28   :  { %10 = sbr.rel (!%p8_p4) target bundleno = 1 (0x1), region = 54 }

// kernel: _lambda_.43
= control target key start
LH: loop header
LB: loop body
LE: loop exit
PB: predicated region body
PF: predicated region fallthrough
CT: control target
= control target key end

     0   :  { %vm37_vm0 = vcmask 261120   ;;  %vm131_vm1 = vcmask 523264   ;;  %s313_s1 = inlined_call_operand.vmem [shape: bf16[32,64], index: 1, kind: input, shape index: {}]   ;;  %s314_s0 = inlined_call_operand.vmem [shape: f32[32,32], index: 0, kind: input, shape index: {}]   ;;  %s315_s2 = inlined_call_operand.vmem [shape: bf16[64,32], index: 2, kind: input, shape index: {}]   ;;  %s316_s3 = inlined_call_operand.vmem [shape: f32[32,32], index: 3, kind: output, shape index: {}]  }
   0x1   :  { %v239_v0 = vld [vmem:[%s313_s1 + $0x8] sm:$0xff]   ;;  %v240_v1 = vld [vmem:[%s313_s1] sm:$0xff]   ;;  %v17_v4 = vld [vmem:[%s314_s0 + $0x10] sm:$0xff] }
   0x2   :  { %219 = vmatprep.subr.bf16.mxu0 %v239_v0  ;;  %v15_v2 = vld [vmem:[%s314_s0] sm:$0xff]  ;;  %v16_v3 = vld [vmem:[%s314_s0 + $0x8] sm:$0xff]  ;;  %v18_v6 = vld [vmem:[%s314_s0 + $0x18] sm:$0xff] }
   0x3   :  { %220 = vmatpush3.bf16.msra.mxu0 %v239_v0  ;;  %v19_v5 = vpack.c.bf16 %v16_v3, %v15_v2  ;;  %v241_v7 = vld [vmem:[%s315_s2 + $0x18] sm:$0xff]   ;;  %v20_v8 = vpack.c.bf16 %v18_v6, %v17_v4  ;;  %v242_v9 = vld [vmem:[%s315_s2 + $0x10] sm:$0xff]   ;;  %v243_v10 = vld [vmem:[%s315_s2 + $0x8] sm:$0xff]  }
   0x4   :  { %221 = vmatprep.subr.bf16.mxu0 %v240_v1  ;;  %227 = vmatprep.subr.bf16.mxu1 %v241_v7  ;;  %v244_v11 = vld [vmem:[%s315_s2] sm:$0xff]  }
   0x5   :  { %223 = vmatprep.mubr.msk.bf16.mxu0 %vm37_vm0, %v19_v5  ;;  %228 = vmatpush3.bf16.msra.mxu1 %v241_v7 }
   0x6   :  { %229 = vmatprep.subr.bf16.mxu1 %v242_v9 }
   0x7   :  { %222 = vmatpush3.bf16.msra.mxu0 %v240_v1 }
   0x9   :  { %230 = vmatpush3.bf16.msra.mxu1 %v242_v9 }
   0xa   :  { %224 = vmatmul.mubr.msk.bf16.vlgmr.msra.gmra.mxu0 %vm37_vm0, %v20_v8  ;;  %231 = vmatprep.subr.bf16.mxu1 %v243_v10 }
   0xd   :  { %232 = vmatpush3.bf16.msra.mxu1 %v243_v10 }
   0xe   :  { %233 = vmatprep.subr.bf16.mxu1 %v244_v11 }
  0x11   :  { %234 = vmatpush3.bf16.msra.mxu1 %v244_v11 }
  0xca   :  { %v225_v12 = vpop.f32.mrf.mxu0 }
  0xcb   :  { %v95_v19 = vmax.f32 %v225_v12, 0.0 }
  0xcc   :  { %v78_v13 = vpop.f32.mrf.mxu0 }
  0xcd   :  { %v93_v17 = vmax.f32 %v78_v13, 0.0 }
  0xce   :  { %v226_v14 = vpop.f32.mrf.mxu0 }
  0xcf   :  { %v96_v15 = vmax.f32 %v226_v14, 0.0 }
  0xd0   :  { %v81_v16 = vpop.f32.mrf.mxu0 }
  0xd1   :  { %v94_v18 = vmax.f32 %v81_v16, 0.0  ;;  %v98_v21 = vpack.c.bf16 %v96_v15, %v95_v19 }
  0xd3   :  { %v97_v20 = vpack.c.bf16 %v94_v18, %v93_v17 }
  0xd5   :  { %235 = vmatprep.mubr.msk.bf16.mxu1 %vm131_vm1, %v97_v20 }
  0xd6   :  { %236 = vmatmul.mubr.msk.bf16.vlgmr.msra.gmra.mxu1 %vm131_vm1, %v98_v21 }
 0x196   :  { %v237_v22 = vpop.f32.mrf.mxu1 }
 0x197   :  { %v189_v23 = vadd.f32 %v237_v22, %v17_v4 }
 0x198   :  { %v172_v24 = vpop.f32.mrf.mxu1 }
 0x199   :  { %193 = vst.msk [vmem:[%s316_s3 + $0x10] sm:$0xff] %vm37_vm0, %v189_v23  ;;  %v187_v25 = vadd.f32 %v172_v24, %v15_v2 }
 0x19a   :  { %v238_v26 = vpop.f32.mrf.mxu1 }
 0x19b   :  { %191 = vst.msk [vmem:[%s316_s3] sm:$0xff] %vm37_vm0, %v187_v25  ;;  %v190_v27 = vadd.f32 %v238_v26, %v18_v6 }
 0x19c   :  { %v175_v28 = vpop.f32.mrf.mxu1 }
 0x19d   :  { %194 = vst.msk [vmem:[%s316_s3 + $0x18] sm:$0xff] %vm37_vm0, %v190_v27  ;;  %v188_v29 = vadd.f32 %v175_v28, %v16_v3 }
 0x19f   :  { %192 = vst.msk [vmem:[%s316_s3 + $0x8] sm:$0xff] %vm37_vm0, %v188_v29 }

// kernel: _lambda_.45
= control target key start
LH: loop header
LB: loop body
LE: loop exit
PB: predicated region body
PF: predicated region fallthrough
CT: control target
= control target key end

     0   :  { %vm18_vm0 = vcmask 261120   ;;  %s174_s0 = inlined_call_operand.vmem [shape: f32[32,32], index: 0, kind: input, shape index: {}]   ;;  %s175_s1 = inlined_call_operand.vmem [shape: f32[1,32], index: 1, kind: input, shape index: {}]   ;;  %s176_s2 = inlined_call_operand.vmem [shape: f32[1,32], index: 2, kind: input, shape index: {}]   ;;  %s177_s3 = inlined_call_operand.vmem [shape: f32[32,32], index: 3, kind: output, shape index: {}]  }
   0x1   :  { %v14_v0 = vld [vmem:[%s174_s0] sm:$0xff]  ;;  %v16_v1 = vld [vmem:[%s174_s0 + $0x10] sm:$0xff]  ;;  %v15_v2 = vld [vmem:[%s174_s0 + $0x8] sm:$0xff] }
   0x2   :  { %v19_v3 = vsel %vm18_vm0, %v14_v0, 0.0  ;;  %v25_v4 = vsel %vm18_vm0, %v16_v1, 0.0  ;;  %v17_v5 = vld [vmem:[%s174_s0 + $0x18] sm:$0xff]  ;;  %v22_v6 = vsel %vm18_vm0, %v15_v2, 0.0  ;;  %v102_v41 = vld [vmem:[%s175_s1] ss:$0 sm:$0xff] }
   0x3   :  { %20 = vadd.xlane.f32.xlu0 %v19_v3  ;;  %26 = vadd.xlane.f32.xlu1 %v25_v4  ;;  %v28_v7 = vsel %vm18_vm0, %v17_v5, 0.0  ;;  %v103_v43 = vld [vmem:[%s176_s2] ss:$0 sm:$0xff] }
   0x7   :  { %23 = vadd.xlane.f32.xlu0 %v22_v6  ;;  %29 = vadd.xlane.f32.xlu1 %v28_v7 }
  0x8c   :  { %v21_v8 = vpop.xlane.xlu0 %20  ;;  %v27_v9 = vpop.xlane.xlu1 %26 }
  0x8d   :  { %v32_v10 = vmul.f32 0.03125, %v21_v8  ;;  %v34_v11 = vmul.f32 0.03125, %v27_v9 }
  0x8f   :  { %v36_v12 = vsub.f32 %v14_v0, %v32_v10  ;;  %v38_v13 = vsub.f32 %v16_v1, %v34_v11 }
  0x90   :  { %v24_v14 = vpop.xlane.xlu0 %23  ;;  %v30_v15 = vpop.xlane.xlu1 %29 }
  0x91   :  { %v33_v16 = vmul.f32 0.03125, %v24_v14  ;;  %v35_v17 = vmul.f32 0.03125, %v30_v15  ;;  %v40_v18 = vmul.f32 %v36_v12, %v36_v12  ;;  %v42_v19 = vmul.f32 %v38_v13, %v38_v13 }
  0x93   :  { %v37_v20 = vsub.f32 %v15_v2, %v33_v16  ;;  %v39_v21 = vsub.f32 %v17_v5, %v35_v17  ;;  %v44_v22 = vsel %vm18_vm0, %v40_v18, 0.0  ;;  %v50_v23 = vsel %vm18_vm0, %v42_v19, 0.0 }
  0x94   :  { %45 = vadd.xlane.f32.xlu0 %v44_v22 }
  0x95   :  { %v41_v24 = vmul.f32 %v37_v20, %v37_v20  ;;  %v43_v25 = vmul.f32 %v39_v21, %v39_v21 }
  0x97   :  { %v47_v26 = vsel %vm18_vm0, %v41_v24, 0.0  ;;  %v53_v27 = vsel %vm18_vm0, %v43_v25, 0.0 }
  0x98   :  { %51 = vadd.xlane.f32.xlu0 %v50_v23  ;;  %48 = vadd.xlane.f32.xlu1 %v47_v26 }
  0x9c   :  { %54 = vadd.xlane.f32.xlu1 %v53_v27 }
 0x11d   :  { %v46_v28 = vpop.xlane.xlu0 %45 }
 0x11e   :  { %v56_v29 = vmul.f32 0.03125, %v46_v28 }
 0x120   :  { %v60_v30 = vadd.f32 1e-05, %v56_v29 }
 0x121   :  { %v49_v31 = vpop.xlane.xlu1 %48  ;;  %v52_v32 = vpop.xlane.xlu0 %51 }
 0x122   :  { %104 = vrsqrt.f32 %v60_v30  ;;  %v57_v33 = vmul.f32 0.03125, %v49_v31  ;;  %v58_v34 = vmul.f32 0.03125, %v52_v32 }
 0x124   :  { %v61_v35 = vadd.f32 1e-05, %v57_v33  ;;  %v62_v36 = vadd.f32 1e-05, %v58_v34 }
 0x125   :  { %v55_v37 = vpop.xlane.xlu1 %54 }
 0x126   :  { %106 = vrsqrt.f32 %v61_v35  ;;  %v59_v38 = vmul.f32 0.03125, %v55_v37 }
 0x127   :  { %108 = vrsqrt.f32 %v62_v36 }
 0x128   :  { %v63_v39 = vadd.f32 1e-05, %v59_v38 }
 0x12a   :  { %110 = vrsqrt.f32 %v63_v39 }
 0x12f   :  { %v105_v40 = vpop.eup %104 }
 0x130   :  { %v68_v42 = vmul.f32 %v105_v40, %v36_v12 }
 0x132   :  { %v79_v44 = vmul.f32 %v102_v41, %v68_v42 }
 0x133   :  { %v107_v45 = vpop.eup %106 }
 0x134   :  { %v109_v46 = vpop.eup %108  ;;  %v90_v47 = vadd.f32 %v103_v43, %v79_v44  ;;  %v69_v48 = vmul.f32 %v107_v45, %v37_v20 }
 0x135   :  { %v70_v49 = vmul.f32 %v109_v46, %v38_v13 }
 0x136   :  { %94 = vst.msk [vmem:[%s177_s3] sm:$0xff] %vm18_vm0, %v90_v47  ;;  %v80_v50 = vmul.f32 %v102_v41, %v69_v48 }
 0x137   :  { %v111_v51 = vpop.eup %110  ;;  %v81_v52 = vmul.f32 %v102_v41, %v70_v49 }
 0x138   :  { %v91_v53 = vadd.f32 %v103_v43, %v80_v50  ;;  %v71_v54 = vmul.f32 %v111_v51, %v39_v21 }
 0x139   :  { %v92_v55 = vadd.f32 %v103_v43, %v81_v52 }
 0x13a   :  { %95 = vst.msk [vmem:[%s177_s3 + $0x8] sm:$0xff] %vm18_vm0, %v91_v53  ;;  %v82_v56 = vmul.f32 %v102_v41, %v71_v54 }
 0x13b   :  { %96 = vst.msk [vmem:[%s177_s3 + $0x10] sm:$0xff] %vm18_vm0, %v92_v55 }
 0x13c   :  { %v93_v57 = vadd.f32 %v103_v43, %v82_v56 }
 0x13e   :  { %97 = vst.msk [vmem:[%s177_s3 + $0x18] sm:$0xff] %vm18_vm0, %v93_v57 }

// kernel: _lambda_.31
= control target key start
LH: loop header
LB: loop body
LE: loop exit
PB: predicated region body
PF: predicated region fallthrough
CT: control target
= control target key end

     0   :  { %s359_s9 = smov 0   ;;  %s392_s0 = inlined_call_operand.vmem [shape: f32[2,20,32], index: 0, kind: input, shape index: {}]   ;;  %s393_s1 = inlined_call_operand.vmem [shape: f32[2,16,32], index: 1, kind: output, shape index: {0}]   ;;  %s394_s2 = inlined_call_operand.vmem [shape: f32[2,16,32], index: 2, kind: output, shape index: {1}]  }
   0x1 LB: > { %s313_s10 = sadd.s32 4294967295, %s342_s9   ;;  %p317_p0 = scmp.ge.s32.totalorder %s342_s9, 1  ;;  %s342_s9 = sphi %s359_s9, %s13_s9  }
   0x2   : > { %p115_p1 = scmp.lt.s32.totalorder %s342_s9, 3 }
   0x4   : > { %p116_p2 = pnand %p317_p0, %p115_p1 }
   0x5   : > { %p142_p3 = scmp.lt.s32.totalorder (!%p116_p2), %s313_s10, 1 }
   0x6   : > { %119 = sbr.rel (%p116_p2) target bundleno = 36 (0x24), region = 24 }
   0xb   : > { %s396_s10 = smov (!%p142_p3, %s313_s10), 1  ;;  %vm163_vm0 = vcmask 1046528   ;;  %vm173_vm1 = vcmask 1045504   ;;  %vm183_vm2 = vcmask 1044480   ;;  %vm193_vm3 = vcmask 1043456  }
   0xc   : > { %s327_s11 = smul.u32 24, %s396_s10  ;;  %s325_s15 = sshll.u32 %s396_s10, 4  ;;  %vm205_vm4 = vcmask 261120   ;;  %vm210_vm5 = vcmask 1041408   ;;  %vm220_vm6 = vcmask 261122   ;;  %vm223_vm7 = vcmask 254976  }
   0xd   : > { %s156_s18 = scalar_lea.vmem %s394_s2, %s325_s15  ;;  %s151_s21 = scalar_lea.vmem %s393_s1, %s325_s15 }
   0xe   : > { %s146_s14 = scalar_lea.vmem %s392_s0, %s327_s11 }
   0xf   : > { %v157_v0 = vld [vmem:[%s146_s14] sm:$0xff]  ;;  %v158_v1 = vld [vmem:[%s146_s14 + $0x8] sm:$0xff]  ;;  %v159_v2 = vld [vmem:[%s146_s14 + $0x10] sm:$0xf] }
  0x10   : > { %v164_v3 = vrot.slane %v157_v0, 1  ;;  %v165_v4 = vrot.slane %v158_v1, 1  ;;  %v167_v5 = vrot.slane %v159_v2, 1  ;;  %v174_v6 = vrot.slane %v157_v0, 2 }
  0x11   : > { %v175_v7 = vrot.slane %v158_v1, 2  ;;  %v184_v8 = vrot.slane %v157_v0, 3  ;;  %v185_v9 = vrot.slane %v158_v1, 3  ;;  %v194_v10 = vrot.slane %v157_v0, 4 }
  0x12   : > { %v166_v11 = vsel %vm163_vm0, %v164_v3, %v165_v4  ;;  %v195_v12 = vrot.slane %v158_v1, 4  ;;  %v168_v13 = vsel %vm163_vm0, %v165_v4, %v167_v5  ;;  %v177_v14 = vrot.slane %v159_v2, 2 }
  0x13   : > { %v171_v15 = vadd.f32 %v166_v11, %v157_v0  ;;  %v176_v16 = vsel %vm173_vm1, %v174_v6, %v175_v7  ;;  %v172_v17 = vadd.f32 %v168_v13, %v158_v1  ;;  %v186_v18 = vsel %vm183_vm2, %v184_v8, %v185_v9 }
  0x14   : > { %v178_v19 = vsel %vm173_vm1, %v175_v7, %v177_v14  ;;  %v187_v20 = vrot.slane %v159_v2, 3  ;;  %v197_v21 = vrot.slane %v159_v2, 4  ;;  %v196_v24 = vsel %vm193_vm3, %v194_v10, %v195_v12 }
  0x15   : > { %v181_v22 = vadd.f32 %v176_v16, %v171_v15  ;;  %v182_v23 = vadd.f32 %v178_v19, %v172_v17 }
  0x16   : > { %v188_v25 = vsel %vm183_vm2, %v185_v9, %v187_v20  ;;  %v198_v26 = vsel %vm193_vm3, %v195_v12, %v197_v21 }
  0x17   : > { %v191_v27 = vadd.f32 %v186_v18, %v181_v22  ;;  %v192_v28 = vadd.f32 %v188_v25, %v182_v23 }
  0x19   : > { %v201_v29 = vadd.f32 %v196_v24, %v191_v27  ;;  %v202_v30 = vadd.f32 %v198_v26, %v192_v28 }
  0x1b   : > { %v203_v31 = vmul.f32 0.2, %v201_v29  ;;  %v204_v32 = vmul.f32 0.2, %v202_v30 }
  0x1d   : > { %206 = vst.msk [vmem:[%s156_s18] sm:$0xff] %vm205_vm4, %v203_v31  ;;  %207 = vst.msk [vmem:[%s156_s18 + $0x8] sm:$0xff] %vm205_vm4, %v204_v32  ;;  %v212_v33 = vrot.slane %v204_v32, 6  ;;  %v211_v34 = vrot.slane %v203_v31, 6 }
  0x1f   : > { %v217_v35 = vsub.f32 %v157_v0, %v211_v34  ;;  %v213_v36 = vsel %vm210_vm5, %v211_v34, %v212_v33  ;;  %v219_v37 = vsub.f32 %v159_v2, %v212_v33 }
  0x20   : > { %v218_v38 = vsub.f32 %v158_v1, %v213_v36 }
  0x21   : > { %221 = vst.msk [vmem:[%s151_s21 - $0x2] sm:$0xfc] %vm220_vm6, %v217_v35 }
  0x22   : > { %224 = vst.msk [vmem:[%s151_s21 + $0xe] sm:$0x3] %vm223_vm7, %v219_v37 }
  0x23   : > { %222 = vst.msk [vmem:[%s151_s21 + $0x6] sm:$0xff] %vm205_vm4, %v218_v38 }
  0x24 PF: > { %s13_s9 = sadd.s32 1, %s342_s9  }
  0x25   : > { %p10_p4 = scmp.ge.s32.totalorder %s13_s9, 4  }
  0x27   :  { %12 = sbr.rel (!%p10_p4) target bundleno = 1 (0x1), region = 66 }

// kernel: reverse.3
= control target key start
LH: loop header
LB: loop body
LE: loop exit
PB: predicated region body
PF: predicated region fallthrough
CT: control target
= control target key end

     0   :  { %v2_v0 = vlaneseq  ;;  %s240_s0 = inlined_call_operand.vmem [shape: f32[2,8,4,7], index: 0, kind: input, shape index: {}]   ;;  %s241_s1 = inlined_call_operand.vmem [shape: f32[2,8,4,7], index: 1, kind: output, shape index: {}]  }
   0x1   :  { %v51_v2 = vld [vmem:[%s240_s0 + $0x10] sm:$0xff]  ;;  %v47_v3 = vld [vmem:[%s240_s0] sm:$0xff]  ;;  %v53_v4 = vld [vmem:[%s240_s0 + $0x18] sm:$0xff] }
   0x2   :  { %v3_v1 = vsub.s32 6, %v2_v0  ;;  %v49_v5 = vld [vmem:[%s240_s0 + $0x8] sm:$0xff]  ;;  %v55_v7 = vld [vmem:[%s240_s0 + $0x20] sm:$0xff]  ;;  %v61_v8 = vld [vmem:[%s240_s0 + $0x38] sm:$0xff] }
   0x3   :  { %v57_v6 = vld [vmem:[%s240_s0 + $0x28] sm:$0xff]  ;;  %v59_v9 = vld [vmem:[%s240_s0 + $0x30] sm:$0xff] }
   0x4   :  { %4 = vset.pattern.permute.xlu0 %v3_v1  ;;  %181 = vset.pattern.permute.xlu1 %v3_v1 }
   0x5   :  { %79 = vperm.xlu1 %181, %v51_v2   ;;  %67 = vperm.xlu0 %4, %v47_v3  }
   0x9   :  { %85 = vperm.xlu1 %181, %v53_v4   ;;  %73 = vperm.xlu0 %4, %v49_v5  }
   0xd   :  { %97 = vperm.xlu1 %181, %v57_v6   ;;  %91 = vperm.xlu0 %4, %v55_v7  }
  0x11   :  { %109 = vperm.xlu1 %181, %v61_v8   ;;  %103 = vperm.xlu0 %4, %v59_v9  }
  0x80   :  { %v80_v10 = vpop.permute.xlu1 %79  ;;  %v68_v11 = vpop.permute.xlu0 %67 }
  0x81   :  { %159 = vst [vmem:[%s241_s1 + $0x10] sm:$0xff] %v80_v10  ;;  %155 = vst [vmem:[%s241_s1] sm:$0xff] %v68_v11 }
  0x84   :  { %v86_v12 = vpop.permute.xlu1 %85  ;;  %v74_v13 = vpop.permute.xlu0 %73 }
  0x85   :  { %161 = vst [vmem:[%s241_s1 + $0x18] sm:$0xff] %v86_v12  ;;  %157 = vst [vmem:[%s241_s1 + $0x8] sm:$0xff] %v74_v13 }
  0x88   :  { %v98_v14 = vpop.permute.xlu1 %97  ;;  %v92_v15 = vpop.permute.xlu0 %91 }
  0x89   :  { %165 = vst [vmem:[%s241_s1 + $0x28] sm:$0xff] %v98_v14  ;;  %163 = vst [vmem:[%s241_s1 + $0x20] sm:$0xff] %v92_v15 }
  0x8c   :  { %v110_v16 = vpop.permute.xlu1 %109  ;;  %v104_v17 = vpop.permute.xlu0 %103 }
  0x8d   :  { %169 = vst [vmem:[%s241_s1 + $0x38] sm:$0xff] %v110_v16  ;;  %167 = vst [vmem:[%s241_s1 + $0x30] sm:$0xff] %v104_v17 }

// kernel: _lambda_.52
= control target key start
LH: loop header
LB: loop body
LE: loop exit
PB: predicated region body
PF: predicated region fallthrough
CT: control target
= control target key end

     0   :  { %s568_s15 = smov 0   ;;  %s613_s0 = inlined_call_operand.vmem [shape: f32[2,18,32], index: 0, kind: input, shape index: {}]   ;;  %s614_s1 = inlined_call_operand.vmem [shape: bf16[32,4], index: 1, kind: input, shape index: {}]   ;;  %s615_s2 = inlined_call_operand.vmem [shape: bf16[32,4], index: 2, kind: input, shape index: {}]   ;;  %s616_s3 = inlined_call_operand.vmem [shape: bf16[32,4], index: 3, kind: input, shape index: {}]   ;;  %s617_s4 = inlined_call_operand.vmem [shape: f32[2,16,4], index: 4, kind: output, shape index: {}]  }
   0x1 LB: > { %s463_s16 = sadd.s32 4294967295, %s539_s15   ;;  %p467_p0 = scmp.ge.s32.totalorder %s539_s15, 1  ;;  %s539_s15 = sphi %s568_s15, %s14_s15  }
   0x2   : > { %p162_p1 = scmp.lt.s32.totalorder %s539_s15, 3 }
   0x4   : > { %p163_p2 = pnand %p467_p0, %p162_p1 }
   0x5   : > { %p188_p3 = scmp.lt.s32.totalorder (!%p163_p2), %s463_s16, 1 }
   0x6   : > { %166 = sbr.rel (%p163_p2) target bundleno = 233 (0xe9), region = 36 }
   0xb   : > { %v527_v0 = vld [vmem:[%s615_s2 + $0x8] sm:$0xff]   ;;  %v541_v1 = vmov 0.0   ;;  %v529_v3 = vld [vmem:[%s615_s2] sm:$0xff]   ;;  %vm542_vm0 = vmmov 0   ;;  %s619_s16 = smov (!%p188_p3, %s463_s16), 1  ;;  %vm237_vm1 = vcmask 261120  }
   0xc   : > { %492 = vmatprep.subr.bf16.mxu0 %v541_v1  ;;  %500 = vmatprep.subr.bf16.mxu1 %v541_v1  ;;  %v528_v2 = vld [vmem:[%s614_s1 + $0x8] sm:$0xff]   ;;  %v530_v4 = vld [vmem:[%s614_s1] sm:$0xff]   ;;  %s516_s25 = smul.u32 24, %s619_s16  ;;  %vm212_vm2 = vsmask.f32 7424  ;;  %vm343_vm3 = vcmask 1046528  }
   0xd   : > { %493 = vmatpush3.bf16.msra.mxu0 %v527_v0  ;;  %496 = vmatprep.mubr.msk.bf16.mxu0 %vm542_vm0, %v541_v1  ;;  %v531_v16 = vld [vmem:[%s616_s3 + $0x8] sm:$0xff]   ;;  %v532_v18 = vld [vmem:[%s616_s3] sm:$0xff]   ;;  %s482_s7 = sshll.u32 %s619_s16, 4  ;;  %vm405_vm4 = vcmask 31744  }
   0xe   : > { %501 = vmatpush3.bf16.msra.mxu1 %v528_v2  ;;  %494 = vmatprep.subr.bf16.mxu0 %v541_v1  ;;  %s192_s28 = scalar_lea.vmem %s613_s0, %s516_s25  ;;  %s197_s10 = scalar_lea.vmem %s617_s4, %s482_s7 }
   0xf   : > { %502 = vmatprep.subr.bf16.mxu1 %v541_v1  ;;  %504 = vmatprep.mubr.msk.bf16.mxu1 %vm542_vm0, %v541_v1  ;;  %v199_v5 = vld [vmem:[%s192_s28] sm:$0xff]  ;;  %v200_v6 = vld [vmem:[%s192_s28 + $0x8] sm:$0xff]  ;;  %v201_v7 = vld [vmem:[%s192_s28 + $0x10] sm:$0x3] }
  0x10   : > { %v202_v8 = vpack.c.bf16 %v200_v6, %v199_v5  ;;  %v203_v9 = vpack.c.bf16 %v201_v7, %v201_v7 }
  0x11   : > { %495 = vmatpush3.bf16.msra.mxu0 %v529_v3 }
  0x12   : > { %503 = vmatpush3.bf16.msra.mxu1 %v530_v4  ;;  %508 = vmatprep.subr.bf16.mxu0 %v541_v1  ;;  %v214_v10 = vshrl.u32 %v202_v8, 16  ;;  %v216_v11 = vshll.u32 %v202_v8, 16  ;;  %v221_v12 = vshll.u32 %v203_v9, 16  ;;  %v344_v19 = vrot.slane %v202_v8, 1 }
  0x13   : > { %v345_v20 = vrot.slane %v203_v9, 1 }
  0x14   : > { %v218_v13 = vrot.slane %v216_v11, 1  ;;  %v223_v14 = vrot.slane %v221_v12, 1 }
  0x15   : > { %505 = vmatmul.mubr.msk.bf16.vlgmr.msra.gmra.mxu1 %vm237_vm1, %v202_v8  ;;  %v346_v21 = vsel %vm343_vm3, %v344_v19, %v345_v20 }
  0x16   : > { %v219_v15 = vor.u32 %v218_v13, %v214_v10 }
  0x18   : > { %v224_v17 = vsel %vm212_vm2, %v219_v15, %v223_v14 }
  0x19   : > { %497 = vmatmul.mubr.msk.bf16.vlgmr.msra.gmra.mxu0 %vm237_vm1, %v224_v17 }
  0x1a   : > { %509 = vmatpush3.bf16.msra.mxu0 %v531_v16  ;;  %512 = vmatprep.mubr.msk.bf16.mxu0 %vm542_vm0, %v541_v1 }
  0x1b   : > { %510 = vmatprep.subr.bf16.mxu0 %v541_v1 }
  0x1e   : > { %511 = vmatpush3.bf16.msra.mxu0 %v532_v18 }
  0x21   : > { %513 = vmatmul.mubr.msk.bf16.vlgmr.msra.gmra.mxu0 %vm237_vm1, %v346_v21 }
  0xd5   : > { %v330_v22 = vpop.f32.mrf.mxu1 }
  0xd7   : > { %v506_v23 = vpop.f32.mrf.mxu1 }
  0xd9   : > { %v333_v24 = vpop.f32.mrf.mxu1  ;;  %v275_v26 = vpop.f32.mrf.mxu0 }
  0xda   : > { %v331_v30 = vadd.f32 %v330_v22, %v275_v26 }
  0xdb   : > { %v507_v25 = vpop.f32.mrf.mxu1  ;;  %v498_v27 = vpop.f32.mrf.mxu0 }
  0xdd   : > { %v278_v28 = vpop.f32.mrf.mxu0 }
  0xde   : > { %v334_v34 = vadd.f32 %v333_v24, %v278_v28 }
  0xdf   : > { %v499_v29 = vpop.f32.mrf.mxu0 }
  0xe1   : > { %v396_v31 = vpop.f32.mrf.mxu0 }
  0xe2   : > { %v403_v32 = vadd.f32 %v396_v31, %v331_v30 }
  0xe3   : > { %v514_v33 = vpop.f32.mrf.mxu0 }
  0xe4   : > { %406 = vst.msk [vmem:[%s197_s10] sm:$0xff] %vm405_vm4, %v403_v32 }
  0xe5   : > { %v399_v35 = vpop.f32.mrf.mxu0 }
  0xe6   : > { %v404_v36 = vadd.f32 %v399_v35, %v334_v34 }
  0xe7   : > { %v515_v37 = vpop.f32.mrf.mxu0 }
  0xe8   : > { %407 = vst.msk [vmem:[%s197_s10 + $0x8] sm:$0xff] %vm405_vm4, %v404_v36 }
  0xe9 PF: > { %s14_s15 = sadd.s32 1, %s539_s15  }
  0xea   : > { %p11_p4 = scmp.ge.s32.totalorder %s14_s15, 4  }
  0xec   :  { %13 = sbr.rel (!%p11_p4) target bundleno = 1 (0x1), region = 66 }

// kernel: _lambda_.53
= control target key start
LH: loop header
LB: loop body
LE: loop exit
PB: predicated region body
PF: predicated region fallthrough
CT: control target
= control target key end

     0   :  { %vm25_vm0 = vcmask 261120   ;;  %vm181_vm1 = vcmask 31744   ;;  %s298_s0 = inlined_call_operand.vmem [shape: f32[32,32], index: 0, kind: input, shape index: {}]   ;;  %s299_s3 = inlined_call_operand.vmem [shape: bf16[32,4], index: 3, kind: input, shape index: {}]   ;;  %s300_s1 = inlined_call_operand.vmem [shape: f32[1,32], index: 1, kind: input, shape index: {}]   ;;  %s301_s2 = inlined_call_operand.vmem [shape: f32[1,32], index: 2, kind: input, shape index: {}]   ;;  %s302_s4 = inlined_call_operand.vmem [shape: f32[1,4], index: 4, kind: input, shape index: {}]   ;;  %s303_s5 = inlined_call_operand.vmem [shape: f32[32,4], index: 5, kind: output, shape index: {}]  }
   0x1   :  { %v21_v0 = vld [vmem:[%s298_s0] sm:$0xff]  ;;  %v23_v1 = vld [vmem:[%s298_s0 + $0x10] sm:$0xff]  ;;  %v22_v2 = vld [vmem:[%s298_s0 + $0x8] sm:$0xff] }
   0x2   :  { %v26_v3 = vsel %vm25_vm0, %v21_v0, 0.0  ;;  %v32_v4 = vsel %vm25_vm0, %v23_v1, 0.0  ;;  %v24_v5 = vld [vmem:[%s298_s0 + $0x18] sm:$0xff]  ;;  %v29_v6 = vsel %vm25_vm0, %v22_v2, 0.0  ;;  %v209_v28 = vld [vmem:[%s299_s3 + $0x8] sm:$0xff]   ;;  %v210_v29 = vld [vmem:[%s299_s3] sm:$0xff]  }
   0x3   :  { %27 = vadd.xlane.f32.xlu0 %v26_v3  ;;  %33 = vadd.xlane.f32.xlu1 %v32_v4  ;;  %v35_v7 = vsel %vm25_vm0, %v24_v5, 0.0  ;;  %v190_v44 = vld [vmem:[%s300_s1] ss:$0 sm:$0xff] }
   0x4   :  { %201 = vmatprep.subr.bf16.mxu0 %v209_v28  ;;  %v191_v49 = vld [vmem:[%s301_s2] ss:$0 sm:$0xff] }
   0x5   :  { %202 = vmatpush3.bf16.msra.mxu0 %v209_v28  ;;  %v192_v62 = vld [vmem:[%s302_s4] ss:$0 sm:$0xff] }
   0x6   :  { %203 = vmatprep.subr.bf16.mxu0 %v210_v29 }
   0x7   :  { %30 = vadd.xlane.f32.xlu0 %v29_v6  ;;  %36 = vadd.xlane.f32.xlu1 %v35_v7 }
   0x9   :  { %204 = vmatpush3.bf16.msra.mxu0 %v210_v29 }
  0x8c   :  { %v28_v8 = vpop.xlane.xlu0 %27  ;;  %v34_v9 = vpop.xlane.xlu1 %33 }
  0x8d   :  { %v39_v10 = vmul.f32 0.03125, %v28_v8  ;;  %v41_v11 = vmul.f32 0.03125, %v34_v9 }
  0x8f   :  { %v43_v12 = vsub.f32 %v21_v0, %v39_v10  ;;  %v45_v13 = vsub.f32 %v23_v1, %v41_v11 }
  0x90   :  { %v31_v14 = vpop.xlane.xlu0 %30  ;;  %v37_v15 = vpop.xlane.xlu1 %36 }
  0x91   :  { %v40_v16 = vmul.f32 0.03125, %v31_v14  ;;  %v42_v17 = vmul.f32 0.03125, %v37_v15  ;;  %v47_v18 = vmul.f32 %v43_v12, %v43_v12  ;;  %v49_v19 = vmul.f32 %v45_v13, %v45_v13 }
  0x93   :  { %v44_v20 = vsub.f32 %v22_v2, %v40_v16  ;;  %v46_v21 = vsub.f32 %v24_v5, %v42_v17  ;;  %v51_v22 = vsel %vm25_vm0, %v47_v18, 0.0  ;;  %v57_v23 = vsel %vm25_vm0, %v49_v19, 0.0 }
  0x94   :  { %52 = vadd.xlane.f32.xlu0 %v51_v22 }
  0x95   :  { %v48_v24 = vmul.f32 %v44_v20, %v44_v20  ;;  %v50_v25 = vmul.f32 %v46_v21, %v46_v21 }
  0x97   :  { %v54_v26 = vsel %vm25_vm0, %v48_v24, 0.0  ;;  %v60_v27 = vsel %vm25_vm0, %v50_v25, 0.0 }
  0x98   :  { %58 = vadd.xlane.f32.xlu0 %v57_v23  ;;  %55 = vadd.xlane.f32.xlu1 %v54_v26 }
  0x9c   :  { %61 = vadd.xlane.f32.xlu1 %v60_v27 }
 0x11d   :  { %v53_v30 = vpop.xlane.xlu0 %52 }
 0x11e   :  { %v63_v31 = vmul.f32 0.03125, %v53_v30 }
 0x120   :  { %v67_v32 = vadd.f32 1e-05, %v63_v31 }
 0x121   :  { %v56_v33 = vpop.xlane.xlu1 %55  ;;  %v59_v34 = vpop.xlane.xlu0 %58 }
 0x122   :  { %211 = vrsqrt.f32 %v67_v32  ;;  %v64_v35 = vmul.f32 0.03125, %v56_v33  ;;  %v65_v36 = vmul.f32 0.03125, %v59_v34 }
 0x124   :  { %v68_v37 = vadd.f32 1e-05, %v64_v35  ;;  %v69_v38 = vadd.f32 1e-05, %v65_v36 }
 0x125   :  { %v62_v39 = vpop.xlane.xlu1 %61 }
 0x126   :  { %213 = vrsqrt.f32 %v68_v37  ;;  %v66_v40 = vmul.f32 0.03125, %v62_v39 }
 0x127   :  { %215 = vrsqrt.f32 %v69_v38 }
 0x128   :  { %v70_v41 = vadd.f32 1e-05, %v66_v40 }
 0x12a   :  { %217 = vrsqrt.f32 %v70_v41 }
 0x12f   :  { %v212_v42 = vpop.eup %211 }
 0x130   :  { %v75_v43 = vmul.f32 %v212_v42, %v43_v12 }
 0x132   :  { %v86_v48 = vmul.f32 %v190_v44, %v75_v43 }
 0x133   :  { %v214_v45 = vpop.eup %213 }
 0x134   :  { %v216_v46 = vpop.eup %215  ;;  %v76_v47 = vmul.f32 %v214_v45, %v44_v20  ;;  %v97_v53 = vadd.f32 %v191_v49, %v86_v48 }
 0x135   :  { %v77_v50 = vmul.f32 %v216_v46, %v45_v13 }
 0x136   :  { %v87_v51 = vmul.f32 %v190_v44, %v76_v47 }
 0x137   :  { %v218_v52 = vpop.eup %217  ;;  %v88_v56 = vmul.f32 %v190_v44, %v77_v50 }
 0x138   :  { %v98_v54 = vadd.f32 %v191_v49, %v87_v51  ;;  %v78_v55 = vmul.f32 %v218_v52, %v46_v21 }
 0x139   :  { %v99_v59 = vadd.f32 %v191_v49, %v88_v56 }
 0x13a   :  { %v101_v57 = vpack.c.bf16 %v98_v54, %v97_v53  ;;  %v89_v58 = vmul.f32 %v190_v44, %v78_v55 }
 0x13c   :  { %205 = vmatprep.mubr.msk.bf16.mxu0 %vm25_vm0, %v101_v57  ;;  %v100_v60 = vadd.f32 %v191_v49, %v89_v58 }
 0x13e   :  { %v102_v61 = vpack.c.bf16 %v100_v60, %v99_v59 }
 0x140   :  { %206 = vmatmul.mubr.msk.bf16.vlgmr.msra.gmra.mxu0 %vm25_vm0, %v102_v61 }
 0x200   :  { %v207_v63 = vpop.f32.mrf.mxu0 }
 0x201   :  { %v175_v0 = vadd.f32 %v207_v63, %v192_v62 }
 0x202   :  { %v166_v1 = vpop.f32.mrf.mxu0 }
 0x203   :  { %184 = vst.msk [vmem:[%s303_s5 + $0x10] sm:$0xff] %vm181_vm1, %v175_v0  ;;  %v167_v2 = vadd.f32 %v192_v62, %v166_v1 }
 0x204   :  { %v208_v3 = vpop.f32.mrf.mxu0 }
 0x205   :  { %182 = vst.msk [vmem:[%s303_s5] sm:$0xff] %vm181_vm1, %v167_v2  ;;  %v178_v4 = vadd.f32 %v208_v3, %v192_v62 }
 0x206   :  { %v169_v5 = vpop.f32.mrf.mxu0 }
 0x207   :  { %185 = vst.msk [vmem:[%s303_s5 + $0x18] sm:$0xff] %vm181_vm1, %v178_v4  ;;  %v170_v6 = vadd.f32 %v192_v62, %v169_v5 }
 0x209   :  { %183 = vst.msk [vmem:[%s303_s5 + $0x8] sm:$0xff] %vm181_vm1, %v170_v6 }

</bundles_post_ra>
